<compile_context>
chip_gen: v7x
topology: tpu7x:2x2x1
jax: 0.10.0
libtpu: 0.0.40
codegen_flags: <defaults>
</compile_context>

<pallas_src>
import functools
import math

import jax
import jax.numpy as jnp
from jax import lax
from jax.experimental import pallas as pl
from jax.experimental.pallas import tpu as pltpu

_VMEM_LIMIT = 48 * 1024 * 1024  # fits v7x 64 MiB physical VMEM with headroom


def _pick_tile(dim, pref, unit):
    """Largest multiple of `unit` <= `pref` that evenly divides `dim`; else `dim`.

    Falling back to `dim` keeps the block equal to the full array dimension,
    which always satisfies the TPU (8, 128) block-shape rule."""
    if dim <= pref:
        return dim
    t = (pref // unit) * unit
    while t >= unit:
        if dim % t == 0:
            return t
        t -= unit
    return dim


# ----------------------------------------------------------------------------
# Pallas kernels
# ----------------------------------------------------------------------------

def _matmul_kernel(x_ref, w_ref, b_ref, o_ref, acc_ref, *, activation):
    """Tiled o = act(x @ w + b); grid = (M/tm, N/tn, K/tk), K innermost."""
    k = pl.program_id(2)

    @pl.when(k == 0)
    def _():
        acc_ref[...] = jnp.zeros_like(acc_ref)

    acc_ref[...] += jnp.dot(x_ref[...], w_ref[...],
                            preferred_element_type=jnp.float32)

    @pl.when(k == pl.num_programs(2) - 1)
    def _():
        y = acc_ref[...] + b_ref[...]
        if activation == "relu":
            y = jnp.maximum(y, 0.0)
        o_ref[...] = y.astype(o_ref.dtype)


def linear(x, w, b, activation="none"):
    """x:[M,K] @ w:[K,N] + b:[N] via an (M, N, K)-tiled Pallas matmul."""
    m, kdim = x.shape
    n = w.shape[1]
    tm = _pick_tile(m, 256, 8)
    tn = _pick_tile(n, 512, 128)
    tk = _pick_tile(kdim, 512, 128)
    grid = (m // tm, n // tn, kdim // tk)
    cost = pl.CostEstimate(
        flops=2 * m * n * kdim,
        transcendentals=0,
        bytes_accessed=4 * (m * kdim + kdim * n + m * n + n))
    return pl.pallas_call(
        functools.partial(_matmul_kernel, activation=activation),
        out_shape=jax.ShapeDtypeStruct((m, n), jnp.float32),
        grid=grid,
        in_specs=[
            pl.BlockSpec((tm, tk), lambda i, j, k: (i, k)),
            pl.BlockSpec((tk, tn), lambda i, j, k: (k, j)),
            pl.BlockSpec((1, tn), lambda i, j, k: (0, j)),
        ],
        out_specs=pl.BlockSpec((tm, tn), lambda i, j, k: (i, j)),
        scratch_shapes=[pltpu.VMEM((tm, tn), jnp.float32)],
        compiler_params=pltpu.CompilerParams(
            dimension_semantics=("parallel", "parallel", "arbitrary"),
            vmem_limit_bytes=_VMEM_LIMIT),
        cost_estimate=cost,
    )(x, w, b.reshape(1, n))


def _linear_add_ln_kernel(x_ref, w_ref, b_ref, r_ref, g_ref, bb_ref, o_ref,
                          acc_ref, *, eps):
    """o = LayerNorm((x @ w + b) + r); grid = (M/tm, K/tk), full N per block."""
    k = pl.program_id(1)

    @pl.when(k == 0)
    def _():
        acc_ref[...] = jnp.zeros_like(acc_ref)

    acc_ref[...] += jnp.dot(x_ref[...], w_ref[...],
                            preferred_element_type=jnp.float32)

    @pl.when(k == pl.num_programs(1) - 1)
    def _():
        y = acc_ref[...] + b_ref[...] + r_ref[...]
        mean = jnp.mean(y, axis=-1, keepdims=True)
        var = jnp.mean((y - mean) ** 2, axis=-1, keepdims=True)
        yn = (y - mean) * lax.rsqrt(var + eps)
        o_ref[...] = (yn * g_ref[...] + bb_ref[...]).astype(o_ref.dtype)


def linear_add_ln(x, w, b, residual, gamma, beta, eps=1e-12):
    """Fused (x @ w + b) + residual -> LayerNorm(gamma, beta).  N kept whole
    so the row-wise LayerNorm reduction happens in the matmul epilogue."""
    m, kdim = x.shape
    n = w.shape[1]
    tm = _pick_tile(m, 256, 8)
    tk = _pick_tile(kdim, 512, 128)
    grid = (m // tm, kdim // tk)
    cost = pl.CostEstimate(
        flops=2 * m * n * kdim + 8 * m * n,
        transcendentals=m,
        bytes_accessed=4 * (m * kdim + kdim * n + 2 * m * n + 3 * n))
    return pl.pallas_call(
        functools.partial(_linear_add_ln_kernel, eps=eps),
        out_shape=jax.ShapeDtypeStruct((m, n), jnp.float32),
        grid=grid,
        in_specs=[
            pl.BlockSpec((tm, tk), lambda i, k: (i, k)),
            pl.BlockSpec((tk, n), lambda i, k: (k, 0)),
            pl.BlockSpec((1, n), lambda i, k: (0, 0)),
            pl.BlockSpec((tm, n), lambda i, k: (i, 0)),
            pl.BlockSpec((1, n), lambda i, k: (0, 0)),
            pl.BlockSpec((1, n), lambda i, k: (0, 0)),
        ],
        out_specs=pl.BlockSpec((tm, n), lambda i, k: (i, 0)),
        scratch_shapes=[pltpu.VMEM((tm, n), jnp.float32)],
        compiler_params=pltpu.CompilerParams(
            dimension_semantics=("parallel", "arbitrary"),
            vmem_limit_bytes=_VMEM_LIMIT),
        cost_estimate=cost,
    )(x, w, b.reshape(1, n), residual, gamma.reshape(1, n), beta.reshape(1, n))


def _attn_block_kernel(q_ref, kv_ref, m_ref, r_ref, wo_ref, bo_ref,
                       g_ref, bb_ref, o_ref, *, n_head, scale, eps):
    """Fused multi-head attention block for one batch element, all heads:
         out = LayerNorm(softmax(mask(q k^T / sqrt(dh))) v  @ wo + bo + residual)
    Activations stay in [S, d_model] layout; heads are static lane slices of
    the q / fused-kv blocks, and the only HBM write is the post-LN result."""
    d = q_ref.shape[-1]
    dh = d // n_head
    neg = m_ref[0, 0] == 0                       # [Sq, Sk], loaded once / batch
    heads = []
    for h in range(n_head):
        lo = h * dh
        qh = q_ref[0, :, lo:lo + dh] * scale     # fold 1/sqrt(dh) into q
        kh = kv_ref[0, :, lo:lo + dh]
        vh = kv_ref[0, :, d + lo:d + lo + dh]
        # q @ k^T without materializing a transpose of k.
        s = lax.dot_general(qh, kh, (((1,), (1,)), ((), ())),
                            preferred_element_type=jnp.float32)
        s = jnp.where(neg, -10000.0, s)          # masked_fill(mask == 0, -10000)
        s = s - jnp.max(s, axis=-1, keepdims=True)
        p = jnp.exp(s)
        p = p * pl.reciprocal(jnp.sum(p, axis=-1, keepdims=True), approx=True)
        heads.append(jnp.dot(p, vh, preferred_element_type=jnp.float32))
    attn = jnp.concatenate(heads, axis=-1)       # [Sq, D], stays in VMEM
    # fused output projection + bias + residual + LayerNorm
    y = jnp.dot(attn, wo_ref[...], preferred_element_type=jnp.float32)
    y = y + bo_ref[...] + r_ref[0]
    mean = jnp.mean(y, axis=-1, keepdims=True)
    var = jnp.mean((y - mean) ** 2, axis=-1, keepdims=True)
    yn = (y - mean) * lax.rsqrt(var + eps)
    o_ref[0] = (yn * g_ref[...] + bb_ref[...]).astype(o_ref.dtype)


def attention_block(q, kv, mask, residual, wo, bo, gamma, beta, n_head,
                    eps=1e-12):
    """q:[B,Sq,D]  kv:[B,Sk,2D]  mask:[B,1,Sq,Sk]  residual:[B,Sq,D] -> [B,Sq,D].

    One grid step per batch element; per-head attention, output projection,
    residual add and LayerNorm all happen in VMEM."""
    b, sq, d = q.shape
    sk = kv.shape[1]
    dh = d // n_head
    scale = 1.0 / math.sqrt(dh)
    cost = pl.CostEstimate(
        flops=4 * b * sq * sk * d + 2 * b * sq * d * d + 8 * b * sq * d,
        transcendentals=b * n_head * sq * sk + b * sq,
        bytes_accessed=4 * (b * sq * d + 2 * b * sk * d + b * sq * sk
                            + 2 * b * sq * d + d * d + 3 * d))
    return pl.pallas_call(
        functools.partial(_attn_block_kernel, n_head=n_head, scale=scale,
                          eps=eps),
        out_shape=jax.ShapeDtypeStruct((b, sq, d), jnp.float32),
        grid=(b,),
        in_specs=[
            pl.BlockSpec((1, sq, d), lambda i: (i, 0, 0)),
            pl.BlockSpec((1, sk, 2 * d), lambda i: (i, 0, 0)),
            pl.BlockSpec((1, 1, sq, sk), lambda i: (i, 0, 0, 0)),
            pl.BlockSpec((1, sq, d), lambda i: (i, 0, 0)),
            pl.BlockSpec((d, d), lambda i: (0, 0)),
            pl.BlockSpec((1, d), lambda i: (0, 0)),
            pl.BlockSpec((1, d), lambda i: (0, 0)),
            pl.BlockSpec((1, d), lambda i: (0, 0)),
        ],
        out_specs=pl.BlockSpec((1, sq, d), lambda i: (i, 0, 0)),
        compiler_params=pltpu.CompilerParams(
            dimension_semantics=("parallel",),
            vmem_limit_bytes=_VMEM_LIMIT),
        cost_estimate=cost,
    )(q, kv, mask, residual, wo, bo.reshape(1, d), gamma.reshape(1, d),
      beta.reshape(1, d))


# ----------------------------------------------------------------------------
# Model pieces (glue around the kernels)
# ----------------------------------------------------------------------------

def decoder_layer(p, dec, enc, t_mask, s_mask, n_head):
    b, s, d = dec.shape
    n = b * s
    # self-attention: fused [d, 3d] QKV projection; K/V kept fused for the
    # attention kernel (q is split off once in XLA).
    qkv = linear(dec.reshape(n, d), p["attn1"]["wqkv"],
                 p["attn1"]["bqkv"]).reshape(b, s, 3 * d)
    q = qkv[..., :d]
    kv = qkv[..., d:]
    # attention + out-projection + (dropout=id) + residual + LN1, one kernel
    x = attention_block(q, kv, t_mask, dec, p["attn1"]["wo"], p["attn1"]["bo"],
                        p["ln1_g"], p["ln1_b"], n_head)
    if enc is not None:
        sk = enc.shape[1]
        qc = linear(x.reshape(n, d), p["cross"]["wq"],
                    p["cross"]["bq"]).reshape(b, s, d)
        kvc = linear(enc.reshape(b * sk, d), p["cross"]["wkv"],
                     p["cross"]["bkv"]).reshape(b, sk, 2 * d)
        x = attention_block(qc, kvc, s_mask, x, p["cross"]["wo"],
                            p["cross"]["bo"], p["ln2_g"], p["ln2_b"], n_head)
    # FFN: linear+ReLU, then second linear fused with residual + LN3
    h = linear(x.reshape(n, d), p["ffn_w1"], p["ffn_b1"], activation="relu")
    x = linear_add_ln(h, p["ffn_w2"], p["ffn_b2"],
                      x.reshape(n, d), p["ln3_g"], p["ln3_b"]).reshape(b, s, d)
    return x


def decoder_forward(params, dec_ids, enc, t_mask, s_mask, n_head):
    b, s = dec_ids.shape
    # TransformerEmbedding: token gather + sinusoidal positional encoding (glue)
    tok = params["tok_emb"][dec_ids]
    pos = params["pos_emb"][:s]
    x = tok + pos[None, :, :]                   # embedding dropout = identity
    for lp in params["layers"]:
        x = decoder_layer(lp, x, enc, t_mask, s_mask, n_head)
    d = x.shape[-1]
    vocab = params["fc_w"].shape[1]
    logits = linear(x.reshape(b * s, d), params["fc_w"], params["fc_b"])
    return logits.reshape(b, s, vocab)


# ----------------------------------------------------------------------------
# Deterministic parameter init
# ----------------------------------------------------------------------------

def _sinusoidal(max_len, d_model):
    pos = jnp.arange(max_len, dtype=jnp.float32)[:, None]
    two_i = jnp.arange(0, d_model, 2, dtype=jnp.float32)
    div = jnp.power(10000.0, two_i / d_model)
    enc = jnp.zeros((max_len, d_model), jnp.float32)
    enc = enc.at[:, 0::2].set(jnp.sin(pos / div))
    enc = enc.at[:, 1::2].set(jnp.cos(pos / div))
    return enc


def init_params(key, vocab, max_len, d_model, ffn_hidden, n_layer, pad):
    keys = iter(jax.random.split(key, 256))

    def dense(d_in, d_out):
        w = 0.02 * jax.random.normal(next(keys), (d_in, d_out), jnp.float32)
        return w, jnp.zeros((d_out,), jnp.float32)

    tok_emb = 0.02 * jax.random.normal(next(keys), (vocab, d_model), jnp.float32)
    tok_emb = tok_emb.at[pad].set(0.0)          # padding_idx row = 0

    layers = []
    for _ in range(n_layer):
        wq, bq = dense(d_model, d_model)
        wk, bk = dense(d_model, d_model)
        wv, bv = dense(d_model, d_model)
        wo, bo = dense(d_model, d_model)
        attn1 = dict(wqkv=jnp.concatenate([wq, wk, wv], axis=1),
                     bqkv=jnp.concatenate([bq, bk, bv]),
                     wo=wo, bo=bo)
        cq, cbq = dense(d_model, d_model)
        ck, cbk = dense(d_model, d_model)
        cv, cbv = dense(d_model, d_model)
        cwo, cbo = dense(d_model, d_model)
        cross = dict(wq=cq, bq=cbq,
                     wkv=jnp.concatenate([ck, cv], axis=1),
                     bkv=jnp.concatenate([cbk, cbv]),
                     wo=cwo, bo=cbo)
        w1, b1 = dense(d_model, ffn_hidden)
        w2, b2 = dense(ffn_hidden, d_model)
        layers.append(dict(
            attn1=attn1, cross=cross,
            ln1_g=jnp.ones((d_model,), jnp.float32), ln1_b=jnp.zeros((d_model,), jnp.float32),
            ln2_g=jnp.ones((d_model,), jnp.float32), ln2_b=jnp.zeros((d_model,), jnp.float32),
            ln3_g=jnp.ones((d_model,), jnp.float32), ln3_b=jnp.zeros((d_model,), jnp.float32),
            ffn_w1=w1, ffn_b1=b1, ffn_w2=w2, ffn_b2=b2,
        ))

    fc_w, fc_b = dense(d_model, vocab)
    return dict(tok_emb=tok_emb, pos_emb=_sinusoidal(max_len, d_model),
                layers=layers, fc_w=fc_w, fc_b=fc_b)


# ----------------------------------------------------------------------------
# Demo
# ----------------------------------------------------------------------------

if __name__ == "__main__":
    B, S_DEC, S_ENC = 2, 8, 8
    D_MODEL, FFN_HIDDEN, N_HEAD, N_LAYER = 32, 64, 4, 2
    VOCAB, MAX_LEN, PAD = 50, 16, 0

    key = jax.random.PRNGKey(0)
    k_par, k_ids, k_enc = jax.random.split(key, 3)

    params = init_params(k_par, VOCAB, MAX_LEN, D_MODEL, FFN_HIDDEN, N_LAYER, PAD)

    dec_ids = jax.random.randint(k_ids, (B, S_DEC), 1, VOCAB, dtype=jnp.int32)
    enc = jax.random.normal(k_enc, (B, S_ENC, D_MODEL), jnp.float32)

    # t_mask: causal (lower-triangular) self-attention mask, 0 = masked.
    causal = jnp.tril(jnp.ones((S_DEC, S_DEC), jnp.int32))
    t_mask = jnp.broadcast_to(causal[None, None], (B, 1, S_DEC, S_DEC)).astype(jnp.int32)
    # s_mask: all-visible cross-attention mask.
    s_mask = jnp.ones((B, 1, S_DEC, S_ENC), jnp.int32)

    fwd = jax.jit(decoder_forward, static_argnums=(5,))
    out = fwd(params, dec_ids, enc, t_mask, s_mask, N_HEAD)
    out = jax.block_until_ready(out)
    assert out.shape == (B, S_DEC, VOCAB), out.shape
    print("KERNEL_OK")
</pallas_src>

<mosaic_0001>
module attributes {stable_mosaic.version = 11 : i64} {
  func.func @_attn_block_kernel(%arg0: i32, %arg1: memref<1x8x32xf32, #tpu.memory_space<vmem>>, %arg2: memref<1x8x64xf32, #tpu.memory_space<vmem>>, %arg3: memref<1x1x8x8xi32, #tpu.memory_space<vmem>>, %arg4: memref<1x8x32xf32, #tpu.memory_space<vmem>>, %arg5: memref<32x32xf32, #tpu.memory_space<vmem>>, %arg6: memref<1x32xf32, #tpu.memory_space<vmem>>, %arg7: memref<1x32xf32, #tpu.memory_space<vmem>>, %arg8: memref<1x32xf32, #tpu.memory_space<vmem>>, %arg9: memref<1x8x32xf32, #tpu.memory_space<vmem>>) attributes {dimension_semantics = [#tpu.dimension_semantics<parallel>], iteration_bounds = array<i64: 2>, scalar_prefetch = 0 : i64, scratch_operands = 0 : i64, tpu.core_type = #tpu.core_type<tc>, window_params = [{transform_indices = @transform_0, window_bounds = array<i64: 1, 8, 32>}, {transform_indices = @transform_1, window_bounds = array<i64: 1, 8, 64>}, {transform_indices = @transform_2, window_bounds = array<i64: 1, 1, 8, 8>}, {transform_indices = @transform_3, window_bounds = array<i64: 1, 8, 32>}, {pipeline_mode = #tpu.pipeline_mode<synchronous>, transform_indices = @transform_4, window_bounds = array<i64: 32, 32>}, {pipeline_mode = #tpu.pipeline_mode<synchronous>, transform_indices = @transform_5, window_bounds = array<i64: 1, 32>}, {pipeline_mode = #tpu.pipeline_mode<synchronous>, transform_indices = @transform_6, window_bounds = array<i64: 1, 32>}, {pipeline_mode = #tpu.pipeline_mode<synchronous>, transform_indices = @transform_7, window_bounds = array<i64: 1, 32>}, {transform_indices = @transform_8, window_bounds = array<i64: 1, 8, 32>}]} {
    %c0 = arith.constant 0 : index
    %c0_0 = arith.constant 0 : index
    %c0_1 = arith.constant 0 : index
    %c0_2 = arith.constant 0 : index
    %0 = vector.load %arg3[%c0, %c0_0, %c0_1, %c0_2] : memref<1x1x8x8xi32, #tpu.memory_space<vmem>>, vector<1x1x8x8xi32>
    %1 = vector.shape_cast %0 : vector<1x1x8x8xi32> to vector<8x8xi32>
    %c0_i32 = arith.constant 0 : i32
    %2 = vector.broadcast %c0_i32 : i32 to vector<8x8xi32>
    %3 = arith.cmpi eq, %1, %2 : vector<8x8xi32>
    %c0_3 = arith.constant 0 : index
    %c0_4 = arith.constant 0 : index
    %c0_5 = arith.constant 0 : index
    %4 = vector.load %arg1[%c0_3, %c0_4, %c0_5] : memref<1x8x32xf32, #tpu.memory_space<vmem>>, vector<1x8x8xf32>
    %5 = vector.shape_cast %4 : vector<1x8x8xf32> to vector<8x8xf32>
    %cst = arith.constant 0.353553385 : f32
    %6 = vector.broadcast %cst : f32 to vector<8x8xf32>
    %7 = arith.mulf %5, %6 : vector<8x8xf32>
    %c0_6 = arith.constant 0 : index
    %c0_7 = arith.constant 0 : index
    %c0_8 = arith.constant 0 : index
    %8 = vector.load %arg2[%c0_6, %c0_7, %c0_8] : memref<1x8x64xf32, #tpu.memory_space<vmem>>, vector<1x8x8xf32>
    %9 = vector.shape_cast %8 : vector<1x8x8xf32> to vector<8x8xf32>
    %c0_9 = arith.constant 0 : index
    %c0_10 = arith.constant 0 : index
    %c32 = arith.constant 32 : index
    %10 = vector.load %arg2[%c0_9, %c0_10, %c32] : memref<1x8x64xf32, #tpu.memory_space<vmem>>, vector<1x8x8xf32>
    %11 = vector.shape_cast %10 : vector<1x8x8xf32> to vector<8x8xf32>
    %cst_11 = arith.constant dense<0.000000e+00> : vector<8x8xf32>
    %12 = tpu.matmul %7, %9, %cst_11 {dimension_numbers = #tpu.dot_dimension_numbers<[1], [1], [0], [0], [0, 0, 1, 0], [], []>} : vector<8x8xf32>, vector<8x8xf32>, vector<8x8xf32> -> vector<8x8xf32>
    %cst_12 = arith.constant -1.000000e+04 : f32
    %13 = vector.broadcast %cst_12 : f32 to vector<8x8xf32>
    %14 = arith.select %3, %13, %12 : vector<8x8xi1>, vector<8x8xf32>
    %cst_13 = arith.constant dense<0xFF800000> : vector<8xf32>
    %15 = vector.multi_reduction <maximumf>, %14, %cst_13 [1] : vector<8x8xf32> to vector<8xf32>
    %16 = vector.shape_cast %15 : vector<8xf32> to vector<8x1xf32>
    %17 = vector.broadcast %16 : vector<8x1xf32> to vector<8x8xf32>
    %18 = arith.subf %14, %17 : vector<8x8xf32>
    %19 = math.exp %18 : vector<8x8xf32>
    %cst_14 = arith.constant dense<0.000000e+00> : vector<8xf32>
    %20 = vector.multi_reduction <add>, %19, %cst_14 [1] : vector<8x8xf32> to vector<8xf32>
    %21 = vector.shape_cast %20 : vector<8xf32> to vector<8x1xf32>
    %22 = tpu.reciprocal %21 {approx = true} : vector<8x1xf32> -> vector<8x1xf32>
    %23 = vector.broadcast %22 : vector<8x1xf32> to vector<8x8xf32>
    %24 = arith.mulf %19, %23 : vector<8x8xf32>
    %cst_15 = arith.constant dense<0.000000e+00> : vector<8x8xf32>
    %25 = tpu.matmul %24, %11, %cst_15 {dimension_numbers = #tpu.dot_dimension_numbers<[1], [0], [0], [1], [0, 0, 1, 1], [], []>} : vector<8x8xf32>, vector<8x8xf32>, vector<8x8xf32> -> vector<8x8xf32>
    %c0_16 = arith.constant 0 : index
    %c0_17 = arith.constant 0 : index
    %c8 = arith.constant 8 : index
    %26 = vector.load %arg1[%c0_16, %c0_17, %c8] : memref<1x8x32xf32, #tpu.memory_space<vmem>>, vector<1x8x8xf32>
    %27 = vector.shape_cast %26 : vector<1x8x8xf32> to vector<8x8xf32>
    %cst_18 = arith.constant 0.353553385 : f32
    %28 = vector.broadcast %cst_18 : f32 to vector<8x8xf32>
    %29 = arith.mulf %27, %28 : vector<8x8xf32>
    %c0_19 = arith.constant 0 : index
    %c0_20 = arith.constant 0 : index
    %c8_21 = arith.constant 8 : index
    %30 = vector.load %arg2[%c0_19, %c0_20, %c8_21] : memref<1x8x64xf32, #tpu.memory_space<vmem>>, vector<1x8x8xf32>
    %31 = vector.shape_cast %30 : vector<1x8x8xf32> to vector<8x8xf32>
    %c0_22 = arith.constant 0 : index
    %c0_23 = arith.constant 0 : index
    %c40 = arith.constant 40 : index
    %32 = vector.load %arg2[%c0_22, %c0_23, %c40] : memref<1x8x64xf32, #tpu.memory_space<vmem>>, vector<1x8x8xf32>
    %33 = vector.shape_cast %32 : vector<1x8x8xf32> to vector<8x8xf32>
    %cst_24 = arith.constant dense<0.000000e+00> : vector<8x8xf32>
    %34 = tpu.matmul %29, %31, %cst_24 {dimension_numbers = #tpu.dot_dimension_numbers<[1], [1], [0], [0], [0, 0, 1, 0], [], []>} : vector<8x8xf32>, vector<8x8xf32>, vector<8x8xf32> -> vector<8x8xf32>
    %cst_25 = arith.constant -1.000000e+04 : f32
    %35 = vector.broadcast %cst_25 : f32 to vector<8x8xf32>
    %36 = arith.select %3, %35, %34 : vector<8x8xi1>, vector<8x8xf32>
    %cst_26 = arith.constant dense<0xFF800000> : vector<8xf32>
    %37 = vector.multi_reduction <maximumf>, %36, %cst_26 [1] : vector<8x8xf32> to vector<8xf32>
    %38 = vector.shape_cast %37 : vector<8xf32> to vector<8x1xf32>
    %39 = vector.broadcast %38 : vector<8x1xf32> to vector<8x8xf32>
    %40 = arith.subf %36, %39 : vector<8x8xf32>
    %41 = math.exp %40 : vector<8x8xf32>
    %cst_27 = arith.constant dense<0.000000e+00> : vector<8xf32>
    %42 = vector.multi_reduction <add>, %41, %cst_27 [1] : vector<8x8xf32> to vector<8xf32>
    %43 = vector.shape_cast %42 : vector<8xf32> to vector<8x1xf32>
    %44 = tpu.reciprocal %43 {approx = true} : vector<8x1xf32> -> vector<8x1xf32>
    %45 = vector.broadcast %44 : vector<8x1xf32> to vector<8x8xf32>
    %46 = arith.mulf %41, %45 : vector<8x8xf32>
    %cst_28 = arith.constant dense<0.000000e+00> : vector<8x8xf32>
    %47 = tpu.matmul %46, %33, %cst_28 {dimension_numbers = #tpu.dot_dimension_numbers<[1], [0], [0], [1], [0, 0, 1, 1], [], []>} : vector<8x8xf32>, vector<8x8xf32>, vector<8x8xf32> -> vector<8x8xf32>
    %c0_29 = arith.constant 0 : index
    %c0_30 = arith.constant 0 : index
    %c16 = arith.constant 16 : index
    %48 = vector.load %arg1[%c0_29, %c0_30, %c16] : memref<1x8x32xf32, #tpu.memory_space<vmem>>, vector<1x8x8xf32>
    %49 = vector.shape_cast %48 : vector<1x8x8xf32> to vector<8x8xf32>
    %cst_31 = arith.constant 0.353553385 : f32
    %50 = vector.broadcast %cst_31 : f32 to vector<8x8xf32>
    %51 = arith.mulf %49, %50 : vector<8x8xf32>
    %c0_32 = arith.constant 0 : index
    %c0_33 = arith.constant 0 : index
    %c16_34 = arith.constant 16 : index
    %52 = vector.load %arg2[%c0_32, %c0_33, %c16_34] : memref<1x8x64xf32, #tpu.memory_space<vmem>>, vector<1x8x8xf32>
    %53 = vector.shape_cast %52 : vector<1x8x8xf32> to vector<8x8xf32>
    %c0_35 = arith.constant 0 : index
    %c0_36 = arith.constant 0 : index
    %c48 = arith.constant 48 : index
    %54 = vector.load %arg2[%c0_35, %c0_36, %c48] : memref<1x8x64xf32, #tpu.memory_space<vmem>>, vector<1x8x8xf32>
    %55 = vector.shape_cast %54 : vector<1x8x8xf32> to vector<8x8xf32>
    %cst_37 = arith.constant dense<0.000000e+00> : vector<8x8xf32>
    %56 = tpu.matmul %51, %53, %cst_37 {dimension_numbers = #tpu.dot_dimension_numbers<[1], [1], [0], [0], [0, 0, 1, 0], [], []>} : vector<8x8xf32>, vector<8x8xf32>, vector<8x8xf32> -> vector<8x8xf32>
    %cst_38 = arith.constant -1.000000e+04 : f32
    %57 = vector.broadcast %cst_38 : f32 to vector<8x8xf32>
    %58 = arith.select %3, %57, %56 : vector<8x8xi1>, vector<8x8xf32>
    %cst_39 = arith.constant dense<0xFF800000> : vector<8xf32>
    %59 = vector.multi_reduction <maximumf>, %58, %cst_39 [1] : vector<8x8xf32> to vector<8xf32>
    %60 = vector.shape_cast %59 : vector<8xf32> to vector<8x1xf32>
    %61 = vector.broadcast %60 : vector<8x1xf32> to vector<8x8xf32>
    %62 = arith.subf %58, %61 : vector<8x8xf32>
    %63 = math.exp %62 : vector<8x8xf32>
    %cst_40 = arith.constant dense<0.000000e+00> : vector<8xf32>
    %64 = vector.multi_reduction <add>, %63, %cst_40 [1] : vector<8x8xf32> to vector<8xf32>
    %65 = vector.shape_cast %64 : vector<8xf32> to vector<8x1xf32>
    %66 = tpu.reciprocal %65 {approx = true} : vector<8x1xf32> -> vector<8x1xf32>
    %67 = vector.broadcast %66 : vector<8x1xf32> to vector<8x8xf32>
    %68 = arith.mulf %63, %67 : vector<8x8xf32>
    %cst_41 = arith.constant dense<0.000000e+00> : vector<8x8xf32>
    %69 = tpu.matmul %68, %55, %cst_41 {dimension_numbers = #tpu.dot_dimension_numbers<[1], [0], [0], [1], [0, 0, 1, 1], [], []>} : vector<8x8xf32>, vector<8x8xf32>, vector<8x8xf32> -> vector<8x8xf32>
    %c0_42 = arith.constant 0 : index
    %c0_43 = arith.constant 0 : index
    %c24 = arith.constant 24 : index
    %70 = vector.load %arg1[%c0_42, %c0_43, %c24] : memref<1x8x32xf32, #tpu.memory_space<vmem>>, vector<1x8x8xf32>
    %71 = vector.shape_cast %70 : vector<1x8x8xf32> to vector<8x8xf32>
    %cst_44 = arith.constant 0.353553385 : f32
    %72 = vector.broadcast %cst_44 : f32 to vector<8x8xf32>
    %73 = arith.mulf %71, %72 : vector<8x8xf32>
    %c0_45 = arith.constant 0 : index
    %c0_46 = arith.constant 0 : index
    %c24_47 = arith.constant 24 : index
    %74 = vector.load %arg2[%c0_45, %c0_46, %c24_47] : memref<1x8x64xf32, #tpu.memory_space<vmem>>, vector<1x8x8xf32>
    %75 = vector.shape_cast %74 : vector<1x8x8xf32> to vector<8x8xf32>
    %c0_48 = arith.constant 0 : index
    %c0_49 = arith.constant 0 : index
    %c56 = arith.constant 56 : index
    %76 = vector.load %arg2[%c0_48, %c0_49, %c56] : memref<1x8x64xf32, #tpu.memory_space<vmem>>, vector<1x8x8xf32>
    %77 = vector.shape_cast %76 : vector<1x8x8xf32> to vector<8x8xf32>
    %cst_50 = arith.constant dense<0.000000e+00> : vector<8x8xf32>
    %78 = tpu.matmul %73, %75, %cst_50 {dimension_numbers = #tpu.dot_dimension_numbers<[1], [1], [0], [0], [0, 0, 1, 0], [], []>} : vector<8x8xf32>, vector<8x8xf32>, vector<8x8xf32> -> vector<8x8xf32>
    %cst_51 = arith.constant -1.000000e+04 : f32
    %79 = vector.broadcast %cst_51 : f32 to vector<8x8xf32>
    %80 = arith.select %3, %79, %78 : vector<8x8xi1>, vector<8x8xf32>
    %cst_52 = arith.constant dense<0xFF800000> : vector<8xf32>
    %81 = vector.multi_reduction <maximumf>, %80, %cst_52 [1] : vector<8x8xf32> to vector<8xf32>
    %82 = vector.shape_cast %81 : vector<8xf32> to vector<8x1xf32>
    %83 = vector.broadcast %82 : vector<8x1xf32> to vector<8x8xf32>
    %84 = arith.subf %80, %83 : vector<8x8xf32>
    %85 = math.exp %84 : vector<8x8xf32>
    %cst_53 = arith.constant dense<0.000000e+00> : vector<8xf32>
    %86 = vector.multi_reduction <add>, %85, %cst_53 [1] : vector<8x8xf32> to vector<8xf32>
    %87 = vector.shape_cast %86 : vector<8xf32> to vector<8x1xf32>
    %88 = tpu.reciprocal %87 {approx = true} : vector<8x1xf32> -> vector<8x1xf32>
    %89 = vector.broadcast %88 : vector<8x1xf32> to vector<8x8xf32>
    %90 = arith.mulf %85, %89 : vector<8x8xf32>
    %cst_54 = arith.constant dense<0.000000e+00> : vector<8x8xf32>
    %91 = tpu.matmul %90, %77, %cst_54 {dimension_numbers = #tpu.dot_dimension_numbers<[1], [0], [0], [1], [0, 0, 1, 1], [], []>} : vector<8x8xf32>, vector<8x8xf32>, vector<8x8xf32> -> vector<8x8xf32>
    %92 = tpu.concatenate %25, %47, %69, %91 in 1 : vector<8x8xf32>, vector<8x8xf32>, vector<8x8xf32>, vector<8x8xf32> -> vector<8x32xf32>
    %c0_55 = arith.constant 0 : index
    %c0_56 = arith.constant 0 : index
    %93 = vector.load %arg5[%c0_55, %c0_56] : memref<32x32xf32, #tpu.memory_space<vmem>>, vector<32x32xf32>
    %cst_57 = arith.constant dense<0.000000e+00> : vector<8x32xf32>
    %94 = tpu.matmul %92, %93, %cst_57 {dimension_numbers = #tpu.dot_dimension_numbers<[1], [0], [0], [1], [0, 0, 1, 1], [], []>} : vector<8x32xf32>, vector<32x32xf32>, vector<8x32xf32> -> vector<8x32xf32>
    %c0_58 = arith.constant 0 : index
    %c0_59 = arith.constant 0 : index
    %95 = vector.load %arg6[%c0_58, %c0_59] : memref<1x32xf32, #tpu.memory_space<vmem>>, vector<1x32xf32>
    %96 = vector.broadcast %95 : vector<1x32xf32> to vector<8x32xf32>
    %97 = arith.addf %94, %96 : vector<8x32xf32>
    %c0_60 = arith.constant 0 : index
    %c0_61 = arith.constant 0 : index
    %c0_62 = arith.constant 0 : index
    %98 = vector.load %arg4[%c0_60, %c0_61, %c0_62] : memref<1x8x32xf32, #tpu.memory_space<vmem>>, vector<1x8x32xf32>
    %99 = vector.shape_cast %98 : vector<1x8x32xf32> to vector<8x32xf32>
    %100 = arith.addf %97, %99 : vector<8x32xf32>
    %cst_63 = arith.constant dense<0.000000e+00> : vector<8xf32>
    %101 = vector.multi_reduction <add>, %100, %cst_63 [1] : vector<8x32xf32> to vector<8xf32>
    %102 = vector.shape_cast %101 : vector<8xf32> to vector<8x1xf32>
    %cst_64 = arith.constant 3.200000e+01 : f32
    %103 = vector.broadcast %cst_64 : f32 to vector<8x1xf32>
    %104 = arith.divf %102, %103 : vector<8x1xf32>
    %105 = vector.broadcast %104 : vector<8x1xf32> to vector<8x32xf32>
    %106 = arith.subf %100, %105 : vector<8x32xf32>
    %107 = arith.mulf %106, %106 : vector<8x32xf32>
    %cst_65 = arith.constant dense<0.000000e+00> : vector<8xf32>
    %108 = vector.multi_reduction <add>, %107, %cst_65 [1] : vector<8x32xf32> to vector<8xf32>
    %109 = vector.shape_cast %108 : vector<8xf32> to vector<8x1xf32>
    %cst_66 = arith.constant 3.200000e+01 : f32
    %110 = vector.broadcast %cst_66 : f32 to vector<8x1xf32>
    %111 = arith.divf %109, %110 : vector<8x1xf32>
    %112 = vector.broadcast %104 : vector<8x1xf32> to vector<8x32xf32>
    %113 = arith.subf %100, %112 : vector<8x32xf32>
    %cst_67 = arith.constant 9.99999996E-13 : f32
    %114 = vector.broadcast %cst_67 : f32 to vector<8x1xf32>
    %115 = arith.addf %111, %114 : vector<8x1xf32>
    %116 = math.rsqrt %115 : vector<8x1xf32>
    %117 = vector.broadcast %116 : vector<8x1xf32> to vector<8x32xf32>
    %118 = arith.mulf %113, %117 : vector<8x32xf32>
    %c0_68 = arith.constant 0 : index
    %c0_69 = arith.constant 0 : index
    %119 = vector.load %arg7[%c0_68, %c0_69] : memref<1x32xf32, #tpu.memory_space<vmem>>, vector<1x32xf32>
    %120 = vector.broadcast %119 : vector<1x32xf32> to vector<8x32xf32>
    %121 = arith.mulf %118, %120 : vector<8x32xf32>
    %c0_70 = arith.constant 0 : index
    %c0_71 = arith.constant 0 : index
    %122 = vector.load %arg8[%c0_70, %c0_71] : memref<1x32xf32, #tpu.memory_space<vmem>>, vector<1x32xf32>
    %123 = vector.broadcast %122 : vector<1x32xf32> to vector<8x32xf32>
    %124 = arith.addf %121, %123 : vector<8x32xf32>
    %c0_72 = arith.constant 0 : index
    %c0_73 = arith.constant 0 : index
    %c0_74 = arith.constant 0 : index
    %125 = vector.load %arg9[%c0_72, %c0_73, %c0_74] : memref<1x8x32xf32, #tpu.memory_space<vmem>>, vector<1x8x32xf32>
    %126 = vector.shape_cast %125 : vector<1x8x32xf32> to vector<8x32xf32>
    %127 = vector.shape_cast %124 : vector<8x32xf32> to vector<1x8x32xf32>
    tpu.vector_store %arg9[%c0_72, %c0_73, %c0_74], %127 {strides = array<i32>} : memref<1x8x32xf32, #tpu.memory_space<vmem>>, vector<1x8x32xf32>,
    return
  }
  func.func @transform_0(%arg0: i32) -> (i32, i32, i32) {
    %c0_i32 = arith.constant 0 : i32
    %c0_i32_0 = arith.constant 0 : i32
    %c0_i32_1 = arith.constant 0 : i32
    return %arg0, %c0_i32, %c0_i32_0 : i32, i32, i32
  }
  func.func @transform_1(%arg0: i32) -> (i32, i32, i32) {
    %c0_i32 = arith.constant 0 : i32
    %c0_i32_0 = arith.constant 0 : i32
    %c0_i32_1 = arith.constant 0 : i32
    return %arg0, %c0_i32, %c0_i32_0 : i32, i32, i32
  }
  func.func @transform_2(%arg0: i32) -> (i32, i32, i32, i32) {
    %c0_i32 = arith.constant 0 : i32
    %c0_i32_0 = arith.constant 0 : i32
    %c0_i32_1 = arith.constant 0 : i32
    %c0_i32_2 = arith.constant 0 : i32
    return %arg0, %c0_i32, %c0_i32_0, %c0_i32_1 : i32, i32, i32, i32
  }
  func.func @transform_3(%arg0: i32) -> (i32, i32, i32) {
    %c0_i32 = arith.constant 0 : i32
    %c0_i32_0 = arith.constant 0 : i32
    %c0_i32_1 = arith.constant 0 : i32
    return %arg0, %c0_i32, %c0_i32_0 : i32, i32, i32
  }
  func.func @transform_4(%arg0: i32) -> (i32, i32) {
    %c0_i32 = arith.constant 0 : i32
    %c0_i32_0 = arith.constant 0 : i32
    %c0_i32_1 = arith.constant 0 : i32
    return %c0_i32, %c0_i32_0 : i32, i32
  }
  func.func @transform_5(%arg0: i32) -> (i32, i32) {
    %c0_i32 = arith.constant 0 : i32
    %c0_i32_0 = arith.constant 0 : i32
    %c0_i32_1 = arith.constant 0 : i32
    return %c0_i32, %c0_i32_0 : i32, i32
  }
  func.func @transform_6(%arg0: i32) -> (i32, i32) {
    %c0_i32 = arith.constant 0 : i32
    %c0_i32_0 = arith.constant 0 : i32
    %c0_i32_1 = arith.constant 0 : i32
    return %c0_i32, %c0_i32_0 : i32, i32
  }
  func.func @transform_7(%arg0: i32) -> (i32, i32) {
    %c0_i32 = arith.constant 0 : i32
    %c0_i32_0 = arith.constant 0 : i32
    %c0_i32_1 = arith.constant 0 : i32
    return %c0_i32, %c0_i32_0 : i32, i32
  }
  func.func @transform_8(%arg0: i32) -> (i32, i32, i32) {
    %c0_i32 = arith.constant 0 : i32
    %c0_i32_0 = arith.constant 0 : i32
    %c0_i32_1 = arith.constant 0 : i32
    return %arg0, %c0_i32, %c0_i32_0 : i32, i32, i32
  }
}

module attributes {stable_mosaic.version = 11 : i64} {
  func.func @_matmul_kernel(%arg0: i32, %arg1: i32, %arg2: i32, %arg3: memref<16x32xf32, #tpu.memory_space<vmem>>, %arg4: memref<32x96xf32, #tpu.memory_space<vmem>>, %arg5: memref<1x96xf32, #tpu.memory_space<vmem>>, %arg6: memref<16x96xf32, #tpu.memory_space<vmem>>, %arg7: memref<16x96xf32, #tpu.memory_space<vmem>>) attributes {dimension_semantics = [#tpu.dimension_semantics<parallel>, #tpu.dimension_semantics<parallel>, #tpu.dimension_semantics<arbitrary>], iteration_bounds = array<i64: 1, 1, 1>, scalar_prefetch = 0 : i64, scratch_operands = 1 : i64, tpu.core_type = #tpu.core_type<tc>, window_params = [{transform_indices = @transform_0, window_bounds = array<i64: 16, 32>}, {transform_indices = @transform_1, window_bounds = array<i64: 32, 96>}, {transform_indices = @transform_2, window_bounds = array<i64: 1, 96>}, {transform_indices = @transform_3, window_bounds = array<i64: 16, 96>}]} {
    %c0_i32 = arith.constant 0 : i32
    %0 = arith.cmpi eq, %arg2, %c0_i32 : i32
    %1 = arith.extui %0 : i1 to i32
    %c0_i32_0 = arith.constant 0 : i32
    %2 = arith.cmpi ne, %1, %c0_i32_0 : i32
    scf.if %2 {
      %cst_10 = arith.constant 0.000000e+00 : f32
      %12 = vector.broadcast %cst_10 : f32 to vector<16x96xf32>
      %c0_11 = arith.constant 0 : index
      %c0_12 = arith.constant 0 : index
      %13 = vector.load %arg7[%c0_11, %c0_12] : memref<16x96xf32, #tpu.memory_space<vmem>>, vector<16x96xf32>
      tpu.vector_store %arg7[%c0_11, %c0_12], %12 {strides = array<i32>} : memref<16x96xf32, #tpu.memory_space<vmem>>, vector<16x96xf32>,
    } else {
    }
    %c0 = arith.constant 0 : index
    %c0_1 = arith.constant 0 : index
    %3 = vector.load %arg7[%c0, %c0_1] : memref<16x96xf32, #tpu.memory_space<vmem>>, vector<16x96xf32>
    %c0_2 = arith.constant 0 : index
    %c0_3 = arith.constant 0 : index
    %4 = vector.load %arg3[%c0_2, %c0_3] : memref<16x32xf32, #tpu.memory_space<vmem>>, vector<16x32xf32>
    %c0_4 = arith.constant 0 : index
    %c0_5 = arith.constant 0 : index
    %5 = vector.load %arg4[%c0_4, %c0_5] : memref<32x96xf32, #tpu.memory_space<vmem>>, vector<32x96xf32>
    %cst = arith.constant dense<0.000000e+00> : vector<16x96xf32>
    %6 = tpu.matmul %4, %5, %cst {dimension_numbers = #tpu.dot_dimension_numbers<[1], [0], [0], [1], [0, 0, 1, 1], [], []>} : vector<16x32xf32>, vector<32x96xf32>, vector<16x96xf32> -> vector<16x96xf32>
    %7 = arith.addf %3, %6 : vector<16x96xf32>
    %c0_6 = arith.constant 0 : index
    %c0_7 = arith.constant 0 : index
    %8 = vector.load %arg7[%c0_6, %c0_7] : memref<16x96xf32, #tpu.memory_space<vmem>>, vector<16x96xf32>
    tpu.vector_store %arg7[%c0_6, %c0_7], %7 {strides = array<i32>} : memref<16x96xf32, #tpu.memory_space<vmem>>, vector<16x96xf32>,
    %c0_i32_8 = arith.constant 0 : i32
    %9 = arith.cmpi eq, %arg2, %c0_i32_8 : i32
    %10 = arith.extui %9 : i1 to i32
    %c0_i32_9 = arith.constant 0 : i32
    %11 = arith.cmpi ne, %10, %c0_i32_9 : i32
    scf.if %11 {
      %c0_10 = arith.constant 0 : index
      %c0_11 = arith.constant 0 : index
      %12 = vector.load %arg7[%c0_10, %c0_11] : memref<16x96xf32, #tpu.memory_space<vmem>>, vector<16x96xf32>
      %c0_12 = arith.constant 0 : index
      %c0_13 = arith.constant 0 : index
      %13 = vector.load %arg5[%c0_12, %c0_13] : memref<1x96xf32, #tpu.memory_space<vmem>>, vector<1x96xf32>
      %14 = vector.broadcast %13 : vector<1x96xf32> to vector<16x96xf32>
      %15 = arith.addf %12, %14 : vector<16x96xf32>
      %c0_14 = arith.constant 0 : index
      %c0_15 = arith.constant 0 : index
      %16 = vector.load %arg6[%c0_14, %c0_15] : memref<16x96xf32, #tpu.memory_space<vmem>>, vector<16x96xf32>
      tpu.vector_store %arg6[%c0_14, %c0_15], %15 {strides = array<i32>} : memref<16x96xf32, #tpu.memory_space<vmem>>, vector<16x96xf32>,
    } else {
    }
    return
  }
  func.func @transform_0(%arg0: i32, %arg1: i32, %arg2: i32) -> (i32, i32) {
    %c0_i32 = arith.constant 0 : i32
    return %arg0, %arg2 : i32, i32
  }
  func.func @transform_1(%arg0: i32, %arg1: i32, %arg2: i32) -> (i32, i32) {
    %c0_i32 = arith.constant 0 : i32
    return %arg2, %arg1 : i32, i32
  }
  func.func @transform_2(%arg0: i32, %arg1: i32, %arg2: i32) -> (i32, i32) {
    %c0_i32 = arith.constant 0 : i32
    %c0_i32_0 = arith.constant 0 : i32
    return %c0_i32, %arg1 : i32, i32
  }
  func.func @transform_3(%arg0: i32, %arg1: i32, %arg2: i32) -> (i32, i32) {
    %c0_i32 = arith.constant 0 : i32
    return %arg0, %arg1 : i32, i32
  }
}

module attributes {stable_mosaic.version = 11 : i64} {
  func.func @_matmul_kernel(%arg0: i32, %arg1: i32, %arg2: i32, %arg3: memref<16x32xf32, #tpu.memory_space<vmem>>, %arg4: memref<32x32xf32, #tpu.memory_space<vmem>>, %arg5: memref<1x32xf32, #tpu.memory_space<vmem>>, %arg6: memref<16x32xf32, #tpu.memory_space<vmem>>, %arg7: memref<16x32xf32, #tpu.memory_space<vmem>>) attributes {dimension_semantics = [#tpu.dimension_semantics<parallel>, #tpu.dimension_semantics<parallel>, #tpu.dimension_semantics<arbitrary>], iteration_bounds = array<i64: 1, 1, 1>, scalar_prefetch = 0 : i64, scratch_operands = 1 : i64, tpu.core_type = #tpu.core_type<tc>, window_params = [{transform_indices = @transform_0, window_bounds = array<i64: 16, 32>}, {transform_indices = @transform_1, window_bounds = array<i64: 32, 32>}, {transform_indices = @transform_2, window_bounds = array<i64: 1, 32>}, {transform_indices = @transform_3, window_bounds = array<i64: 16, 32>}]} {
    %c0_i32 = arith.constant 0 : i32
    %0 = arith.cmpi eq, %arg2, %c0_i32 : i32
    %1 = arith.extui %0 : i1 to i32
    %c0_i32_0 = arith.constant 0 : i32
    %2 = arith.cmpi ne, %1, %c0_i32_0 : i32
    scf.if %2 {
      %cst_10 = arith.constant 0.000000e+00 : f32
      %12 = vector.broadcast %cst_10 : f32 to vector<16x32xf32>
      %c0_11 = arith.constant 0 : index
      %c0_12 = arith.constant 0 : index
      %13 = vector.load %arg7[%c0_11, %c0_12] : memref<16x32xf32, #tpu.memory_space<vmem>>, vector<16x32xf32>
      tpu.vector_store %arg7[%c0_11, %c0_12], %12 {strides = array<i32>} : memref<16x32xf32, #tpu.memory_space<vmem>>, vector<16x32xf32>,
    } else {
    }
    %c0 = arith.constant 0 : index
    %c0_1 = arith.constant 0 : index
    %3 = vector.load %arg7[%c0, %c0_1] : memref<16x32xf32, #tpu.memory_space<vmem>>, vector<16x32xf32>
    %c0_2 = arith.constant 0 : index
    %c0_3 = arith.constant 0 : index
    %4 = vector.load %arg3[%c0_2, %c0_3] : memref<16x32xf32, #tpu.memory_space<vmem>>, vector<16x32xf32>
    %c0_4 = arith.constant 0 : index
    %c0_5 = arith.constant 0 : index
    %5 = vector.load %arg4[%c0_4, %c0_5] : memref<32x32xf32, #tpu.memory_space<vmem>>, vector<32x32xf32>
    %cst = arith.constant dense<0.000000e+00> : vector<16x32xf32>
    %6 = tpu.matmul %4, %5, %cst {dimension_numbers = #tpu.dot_dimension_numbers<[1], [0], [0], [1], [0, 0, 1, 1], [], []>} : vector<16x32xf32>, vector<32x32xf32>, vector<16x32xf32> -> vector<16x32xf32>
    %7 = arith.addf %3, %6 : vector<16x32xf32>
    %c0_6 = arith.constant 0 : index
    %c0_7 = arith.constant 0 : index
    %8 = vector.load %arg7[%c0_6, %c0_7] : memref<16x32xf32, #tpu.memory_space<vmem>>, vector<16x32xf32>
    tpu.vector_store %arg7[%c0_6, %c0_7], %7 {strides = array<i32>} : memref<16x32xf32, #tpu.memory_space<vmem>>, vector<16x32xf32>,
    %c0_i32_8 = arith.constant 0 : i32
    %9 = arith.cmpi eq, %arg2, %c0_i32_8 : i32
    %10 = arith.extui %9 : i1 to i32
    %c0_i32_9 = arith.constant 0 : i32
    %11 = arith.cmpi ne, %10, %c0_i32_9 : i32
    scf.if %11 {
      %c0_10 = arith.constant 0 : index
      %c0_11 = arith.constant 0 : index
      %12 = vector.load %arg7[%c0_10, %c0_11] : memref<16x32xf32, #tpu.memory_space<vmem>>, vector<16x32xf32>
      %c0_12 = arith.constant 0 : index
      %c0_13 = arith.constant 0 : index
      %13 = vector.load %arg5[%c0_12, %c0_13] : memref<1x32xf32, #tpu.memory_space<vmem>>, vector<1x32xf32>
      %14 = vector.broadcast %13 : vector<1x32xf32> to vector<16x32xf32>
      %15 = arith.addf %12, %14 : vector<16x32xf32>
      %c0_14 = arith.constant 0 : index
      %c0_15 = arith.constant 0 : index
      %16 = vector.load %arg6[%c0_14, %c0_15] : memref<16x32xf32, #tpu.memory_space<vmem>>, vector<16x32xf32>
      tpu.vector_store %arg6[%c0_14, %c0_15], %15 {strides = array<i32>} : memref<16x32xf32, #tpu.memory_space<vmem>>, vector<16x32xf32>,
    } else {
    }
    return
  }
  func.func @transform_0(%arg0: i32, %arg1: i32, %arg2: i32) -> (i32, i32) {
    %c0_i32 = arith.constant 0 : i32
    return %arg0, %arg2 : i32, i32
  }
  func.func @transform_1(%arg0: i32, %arg1: i32, %arg2: i32) -> (i32, i32) {
    %c0_i32 = arith.constant 0 : i32
    return %arg2, %arg1 : i32, i32
  }
  func.func @transform_2(%arg0: i32, %arg1: i32, %arg2: i32) -> (i32, i32) {
    %c0_i32 = arith.constant 0 : i32
    %c0_i32_0 = arith.constant 0 : i32
    return %c0_i32, %arg1 : i32, i32
  }
  func.func @transform_3(%arg0: i32, %arg1: i32, %arg2: i32) -> (i32, i32) {
    %c0_i32 = arith.constant 0 : i32
    return %arg0, %arg1 : i32, i32
  }
}

module attributes {stable_mosaic.version = 11 : i64} {
  func.func @_matmul_kernel(%arg0: i32, %arg1: i32, %arg2: i32, %arg3: memref<16x32xf32, #tpu.memory_space<vmem>>, %arg4: memref<32x64xf32, #tpu.memory_space<vmem>>, %arg5: memref<1x64xf32, #tpu.memory_space<vmem>>, %arg6: memref<16x64xf32, #tpu.memory_space<vmem>>, %arg7: memref<16x64xf32, #tpu.memory_space<vmem>>) attributes {dimension_semantics = [#tpu.dimension_semantics<parallel>, #tpu.dimension_semantics<parallel>, #tpu.dimension_semantics<arbitrary>], iteration_bounds = array<i64: 1, 1, 1>, scalar_prefetch = 0 : i64, scratch_operands = 1 : i64, tpu.core_type = #tpu.core_type<tc>, window_params = [{transform_indices = @transform_0, window_bounds = array<i64: 16, 32>}, {transform_indices = @transform_1, window_bounds = array<i64: 32, 64>}, {transform_indices = @transform_2, window_bounds = array<i64: 1, 64>}, {transform_indices = @transform_3, window_bounds = array<i64: 16, 64>}]} {
    %c0_i32 = arith.constant 0 : i32
    %0 = arith.cmpi eq, %arg2, %c0_i32 : i32
    %1 = arith.extui %0 : i1 to i32
    %c0_i32_0 = arith.constant 0 : i32
    %2 = arith.cmpi ne, %1, %c0_i32_0 : i32
    scf.if %2 {
      %cst_10 = arith.constant 0.000000e+00 : f32
      %12 = vector.broadcast %cst_10 : f32 to vector<16x64xf32>
      %c0_11 = arith.constant 0 : index
      %c0_12 = arith.constant 0 : index
      %13 = vector.load %arg7[%c0_11, %c0_12] : memref<16x64xf32, #tpu.memory_space<vmem>>, vector<16x64xf32>
      tpu.vector_store %arg7[%c0_11, %c0_12], %12 {strides = array<i32>} : memref<16x64xf32, #tpu.memory_space<vmem>>, vector<16x64xf32>,
    } else {
    }
    %c0 = arith.constant 0 : index
    %c0_1 = arith.constant 0 : index
    %3 = vector.load %arg7[%c0, %c0_1] : memref<16x64xf32, #tpu.memory_space<vmem>>, vector<16x64xf32>
    %c0_2 = arith.constant 0 : index
    %c0_3 = arith.constant 0 : index
    %4 = vector.load %arg3[%c0_2, %c0_3] : memref<16x32xf32, #tpu.memory_space<vmem>>, vector<16x32xf32>
    %c0_4 = arith.constant 0 : index
    %c0_5 = arith.constant 0 : index
    %5 = vector.load %arg4[%c0_4, %c0_5] : memref<32x64xf32, #tpu.memory_space<vmem>>, vector<32x64xf32>
    %cst = arith.constant dense<0.000000e+00> : vector<16x64xf32>
    %6 = tpu.matmul %4, %5, %cst {dimension_numbers = #tpu.dot_dimension_numbers<[1], [0], [0], [1], [0, 0, 1, 1], [], []>} : vector<16x32xf32>, vector<32x64xf32>, vector<16x64xf32> -> vector<16x64xf32>
    %7 = arith.addf %3, %6 : vector<16x64xf32>
    %c0_6 = arith.constant 0 : index
    %c0_7 = arith.constant 0 : index
    %8 = vector.load %arg7[%c0_6, %c0_7] : memref<16x64xf32, #tpu.memory_space<vmem>>, vector<16x64xf32>
    tpu.vector_store %arg7[%c0_6, %c0_7], %7 {strides = array<i32>} : memref<16x64xf32, #tpu.memory_space<vmem>>, vector<16x64xf32>,
    %c0_i32_8 = arith.constant 0 : i32
    %9 = arith.cmpi eq, %arg2, %c0_i32_8 : i32
    %10 = arith.extui %9 : i1 to i32
    %c0_i32_9 = arith.constant 0 : i32
    %11 = arith.cmpi ne, %10, %c0_i32_9 : i32
    scf.if %11 {
      %c0_10 = arith.constant 0 : index
      %c0_11 = arith.constant 0 : index
      %12 = vector.load %arg7[%c0_10, %c0_11] : memref<16x64xf32, #tpu.memory_space<vmem>>, vector<16x64xf32>
      %c0_12 = arith.constant 0 : index
      %c0_13 = arith.constant 0 : index
      %13 = vector.load %arg5[%c0_12, %c0_13] : memref<1x64xf32, #tpu.memory_space<vmem>>, vector<1x64xf32>
      %14 = vector.broadcast %13 : vector<1x64xf32> to vector<16x64xf32>
      %15 = arith.addf %12, %14 : vector<16x64xf32>
      %c0_14 = arith.constant 0 : index
      %c0_15 = arith.constant 0 : index
      %16 = vector.load %arg6[%c0_14, %c0_15] : memref<16x64xf32, #tpu.memory_space<vmem>>, vector<16x64xf32>
      tpu.vector_store %arg6[%c0_14, %c0_15], %15 {strides = array<i32>} : memref<16x64xf32, #tpu.memory_space<vmem>>, vector<16x64xf32>,
    } else {
    }
    return
  }
  func.func @transform_0(%arg0: i32, %arg1: i32, %arg2: i32) -> (i32, i32) {
    %c0_i32 = arith.constant 0 : i32
    return %arg0, %arg2 : i32, i32
  }
  func.func @transform_1(%arg0: i32, %arg1: i32, %arg2: i32) -> (i32, i32) {
    %c0_i32 = arith.constant 0 : i32
    return %arg2, %arg1 : i32, i32
  }
  func.func @transform_2(%arg0: i32, %arg1: i32, %arg2: i32) -> (i32, i32) {
    %c0_i32 = arith.constant 0 : i32
    %c0_i32_0 = arith.constant 0 : i32
    return %c0_i32, %arg1 : i32, i32
  }
  func.func @transform_3(%arg0: i32, %arg1: i32, %arg2: i32) -> (i32, i32) {
    %c0_i32 = arith.constant 0 : i32
    return %arg0, %arg1 : i32, i32
  }
}

module attributes {stable_mosaic.version = 11 : i64} {
  func.func @_matmul_kernel(%arg0: i32, %arg1: i32, %arg2: i32, %arg3: memref<16x32xf32, #tpu.memory_space<vmem>>, %arg4: memref<32x64xf32, #tpu.memory_space<vmem>>, %arg5: memref<1x64xf32, #tpu.memory_space<vmem>>, %arg6: memref<16x64xf32, #tpu.memory_space<vmem>>, %arg7: memref<16x64xf32, #tpu.memory_space<vmem>>) attributes {dimension_semantics = [#tpu.dimension_semantics<parallel>, #tpu.dimension_semantics<parallel>, #tpu.dimension_semantics<arbitrary>], iteration_bounds = array<i64: 1, 1, 1>, scalar_prefetch = 0 : i64, scratch_operands = 1 : i64, tpu.core_type = #tpu.core_type<tc>, window_params = [{transform_indices = @transform_0, window_bounds = array<i64: 16, 32>}, {transform_indices = @transform_1, window_bounds = array<i64: 32, 64>}, {transform_indices = @transform_2, window_bounds = array<i64: 1, 64>}, {transform_indices = @transform_3, window_bounds = array<i64: 16, 64>}]} {
    %c0_i32 = arith.constant 0 : i32
    %0 = arith.cmpi eq, %arg2, %c0_i32 : i32
    %1 = arith.extui %0 : i1 to i32
    %c0_i32_0 = arith.constant 0 : i32
    %2 = arith.cmpi ne, %1, %c0_i32_0 : i32
    scf.if %2 {
      %cst_10 = arith.constant 0.000000e+00 : f32
      %12 = vector.broadcast %cst_10 : f32 to vector<16x64xf32>
      %c0_11 = arith.constant 0 : index
      %c0_12 = arith.constant 0 : index
      %13 = vector.load %arg7[%c0_11, %c0_12] : memref<16x64xf32, #tpu.memory_space<vmem>>, vector<16x64xf32>
      tpu.vector_store %arg7[%c0_11, %c0_12], %12 {strides = array<i32>} : memref<16x64xf32, #tpu.memory_space<vmem>>, vector<16x64xf32>,
    } else {
    }
    %c0 = arith.constant 0 : index
    %c0_1 = arith.constant 0 : index
    %3 = vector.load %arg7[%c0, %c0_1] : memref<16x64xf32, #tpu.memory_space<vmem>>, vector<16x64xf32>
    %c0_2 = arith.constant 0 : index
    %c0_3 = arith.constant 0 : index
    %4 = vector.load %arg3[%c0_2, %c0_3] : memref<16x32xf32, #tpu.memory_space<vmem>>, vector<16x32xf32>
    %c0_4 = arith.constant 0 : index
    %c0_5 = arith.constant 0 : index
    %5 = vector.load %arg4[%c0_4, %c0_5] : memref<32x64xf32, #tpu.memory_space<vmem>>, vector<32x64xf32>
    %cst = arith.constant dense<0.000000e+00> : vector<16x64xf32>
    %6 = tpu.matmul %4, %5, %cst {dimension_numbers = #tpu.dot_dimension_numbers<[1], [0], [0], [1], [0, 0, 1, 1], [], []>} : vector<16x32xf32>, vector<32x64xf32>, vector<16x64xf32> -> vector<16x64xf32>
    %7 = arith.addf %3, %6 : vector<16x64xf32>
    %c0_6 = arith.constant 0 : index
    %c0_7 = arith.constant 0 : index
    %8 = vector.load %arg7[%c0_6, %c0_7] : memref<16x64xf32, #tpu.memory_space<vmem>>, vector<16x64xf32>
    tpu.vector_store %arg7[%c0_6, %c0_7], %7 {strides = array<i32>} : memref<16x64xf32, #tpu.memory_space<vmem>>, vector<16x64xf32>,
    %c0_i32_8 = arith.constant 0 : i32
    %9 = arith.cmpi eq, %arg2, %c0_i32_8 : i32
    %10 = arith.extui %9 : i1 to i32
    %c0_i32_9 = arith.constant 0 : i32
    %11 = arith.cmpi ne, %10, %c0_i32_9 : i32
    scf.if %11 {
      %c0_10 = arith.constant 0 : index
      %c0_11 = arith.constant 0 : index
      %12 = vector.load %arg7[%c0_10, %c0_11] : memref<16x64xf32, #tpu.memory_space<vmem>>, vector<16x64xf32>
      %c0_12 = arith.constant 0 : index
      %c0_13 = arith.constant 0 : index
      %13 = vector.load %arg5[%c0_12, %c0_13] : memref<1x64xf32, #tpu.memory_space<vmem>>, vector<1x64xf32>
      %14 = vector.broadcast %13 : vector<1x64xf32> to vector<16x64xf32>
      %15 = arith.addf %12, %14 : vector<16x64xf32>
      %cst_14 = arith.constant 0.000000e+00 : f32
      %16 = vector.broadcast %cst_14 : f32 to vector<16x64xf32>
      %17 = arith.maximumf %15, %16 : vector<16x64xf32>
      %c0_15 = arith.constant 0 : index
      %c0_16 = arith.constant 0 : index
      %18 = vector.load %arg6[%c0_15, %c0_16] : memref<16x64xf32, #tpu.memory_space<vmem>>, vector<16x64xf32>
      tpu.vector_store %arg6[%c0_15, %c0_16], %17 {strides = array<i32>} : memref<16x64xf32, #tpu.memory_space<vmem>>, vector<16x64xf32>,
    } else {
    }
    return
  }
  func.func @transform_0(%arg0: i32, %arg1: i32, %arg2: i32) -> (i32, i32) {
    %c0_i32 = arith.constant 0 : i32
    return %arg0, %arg2 : i32, i32
  }
  func.func @transform_1(%arg0: i32, %arg1: i32, %arg2: i32) -> (i32, i32) {
    %c0_i32 = arith.constant 0 : i32
    return %arg2, %arg1 : i32, i32
  }
  func.func @transform_2(%arg0: i32, %arg1: i32, %arg2: i32) -> (i32, i32) {
    %c0_i32 = arith.constant 0 : i32
    %c0_i32_0 = arith.constant 0 : i32
    return %c0_i32, %arg1 : i32, i32
  }
  func.func @transform_3(%arg0: i32, %arg1: i32, %arg2: i32) -> (i32, i32) {
    %c0_i32 = arith.constant 0 : i32
    return %arg0, %arg1 : i32, i32
  }
}

module attributes {stable_mosaic.version = 11 : i64} {
  func.func @_linear_add_ln_kernel(%arg0: i32, %arg1: i32, %arg2: memref<16x64xf32, #tpu.memory_space<vmem>>, %arg3: memref<64x32xf32, #tpu.memory_space<vmem>>, %arg4: memref<1x32xf32, #tpu.memory_space<vmem>>, %arg5: memref<16x32xf32, #tpu.memory_space<vmem>>, %arg6: memref<1x32xf32, #tpu.memory_space<vmem>>, %arg7: memref<1x32xf32, #tpu.memory_space<vmem>>, %arg8: memref<16x32xf32, #tpu.memory_space<vmem>>, %arg9: memref<16x32xf32, #tpu.memory_space<vmem>>) attributes {dimension_semantics = [#tpu.dimension_semantics<parallel>, #tpu.dimension_semantics<arbitrary>], iteration_bounds = array<i64: 1, 1>, scalar_prefetch = 0 : i64, scratch_operands = 1 : i64, tpu.core_type = #tpu.core_type<tc>, window_params = [{transform_indices = @transform_0, window_bounds = array<i64: 16, 64>}, {transform_indices = @transform_1, window_bounds = array<i64: 64, 32>}, {pipeline_mode = #tpu.pipeline_mode<synchronous>, transform_indices = @transform_2, window_bounds = array<i64: 1, 32>}, {transform_indices = @transform_3, window_bounds = array<i64: 16, 32>}, {pipeline_mode = #tpu.pipeline_mode<synchronous>, transform_indices = @transform_4, window_bounds = array<i64: 1, 32>}, {pipeline_mode = #tpu.pipeline_mode<synchronous>, transform_indices = @transform_5, window_bounds = array<i64: 1, 32>}, {transform_indices = @transform_6, window_bounds = array<i64: 16, 32>}]} {
    %c0_i32 = arith.constant 0 : i32
    %0 = arith.cmpi eq, %arg1, %c0_i32 : i32
    %1 = arith.extui %0 : i1 to i32
    %c0_i32_0 = arith.constant 0 : i32
    %2 = arith.cmpi ne, %1, %c0_i32_0 : i32
    scf.if %2 {
      %cst_10 = arith.constant 0.000000e+00 : f32
      %12 = vector.broadcast %cst_10 : f32 to vector<16x32xf32>
      %c0_11 = arith.constant 0 : index
      %c0_12 = arith.constant 0 : index
      %13 = vector.load %arg9[%c0_11, %c0_12] : memref<16x32xf32, #tpu.memory_space<vmem>>, vector<16x32xf32>
      tpu.vector_store %arg9[%c0_11, %c0_12], %12 {strides = array<i32>} : memref<16x32xf32, #tpu.memory_space<vmem>>, vector<16x32xf32>,
    } else {
    }
    %c0 = arith.constant 0 : index
    %c0_1 = arith.constant 0 : index
    %3 = vector.load %arg9[%c0, %c0_1] : memref<16x32xf32, #tpu.memory_space<vmem>>, vector<16x32xf32>
    %c0_2 = arith.constant 0 : index
    %c0_3 = arith.constant 0 : index
    %4 = vector.load %arg2[%c0_2, %c0_3] : memref<16x64xf32, #tpu.memory_space<vmem>>, vector<16x64xf32>
    %c0_4 = arith.constant 0 : index
    %c0_5 = arith.constant 0 : index
    %5 = vector.load %arg3[%c0_4, %c0_5] : memref<64x32xf32, #tpu.memory_space<vmem>>, vector<64x32xf32>
    %cst = arith.constant dense<0.000000e+00> : vector<16x32xf32>
    %6 = tpu.matmul %4, %5, %cst {dimension_numbers = #tpu.dot_dimension_numbers<[1], [0], [0], [1], [0, 0, 1, 1], [], []>} : vector<16x64xf32>, vector<64x32xf32>, vector<16x32xf32> -> vector<16x32xf32>
    %7 = arith.addf %3, %6 : vector<16x32xf32>
    %c0_6 = arith.constant 0 : index
    %c0_7 = arith.constant 0 : index
    %8 = vector.load %arg9[%c0_6, %c0_7] : memref<16x32xf32, #tpu.memory_space<vmem>>, vector<16x32xf32>
    tpu.vector_store %arg9[%c0_6, %c0_7], %7 {strides = array<i32>} : memref<16x32xf32, #tpu.memory_space<vmem>>, vector<16x32xf32>,
    %c0_i32_8 = arith.constant 0 : i32
    %9 = arith.cmpi eq, %arg1, %c0_i32_8 : i32
    %10 = arith.extui %9 : i1 to i32
    %c0_i32_9 = arith.constant 0 : i32
    %11 = arith.cmpi ne, %10, %c0_i32_9 : i32
    scf.if %11 {
      %c0_10 = arith.constant 0 : index
      %c0_11 = arith.constant 0 : index
      %12 = vector.load %arg9[%c0_10, %c0_11] : memref<16x32xf32, #tpu.memory_space<vmem>>, vector<16x32xf32>
      %c0_12 = arith.constant 0 : index
      %c0_13 = arith.constant 0 : index
      %13 = vector.load %arg4[%c0_12, %c0_13] : memref<1x32xf32, #tpu.memory_space<vmem>>, vector<1x32xf32>
      %14 = vector.broadcast %13 : vector<1x32xf32> to vector<16x32xf32>
      %15 = arith.addf %12, %14 : vector<16x32xf32>
      %c0_14 = arith.constant 0 : index
      %c0_15 = arith.constant 0 : index
      %16 = vector.load %arg5[%c0_14, %c0_15] : memref<16x32xf32, #tpu.memory_space<vmem>>, vector<16x32xf32>
      %17 = arith.addf %15, %16 : vector<16x32xf32>
      %cst_16 = arith.constant dense<0.000000e+00> : vector<16xf32>
      %18 = vector.multi_reduction <add>, %17, %cst_16 [1] : vector<16x32xf32> to vector<16xf32>
      %19 = vector.shape_cast %18 : vector<16xf32> to vector<16x1xf32>
      %cst_17 = arith.constant 3.200000e+01 : f32
      %20 = vector.broadcast %cst_17 : f32 to vector<16x1xf32>
      %21 = arith.divf %19, %20 : vector<16x1xf32>
      %22 = vector.broadcast %21 : vector<16x1xf32> to vector<16x32xf32>
      %23 = arith.subf %17, %22 : vector<16x32xf32>
      %24 = arith.mulf %23, %23 : vector<16x32xf32>
      %cst_18 = arith.constant dense<0.000000e+00> : vector<16xf32>
      %25 = vector.multi_reduction <add>, %24, %cst_18 [1] : vector<16x32xf32> to vector<16xf32>
      %26 = vector.shape_cast %25 : vector<16xf32> to vector<16x1xf32>
      %cst_19 = arith.constant 3.200000e+01 : f32
      %27 = vector.broadcast %cst_19 : f32 to vector<16x1xf32>
      %28 = arith.divf %26, %27 : vector<16x1xf32>
      %29 = vector.broadcast %21 : vector<16x1xf32> to vector<16x32xf32>
      %30 = arith.subf %17, %29 : vector<16x32xf32>
      %cst_20 = arith.constant 9.99999996E-13 : f32
      %31 = vector.broadcast %cst_20 : f32 to vector<16x1xf32>
      %32 = arith.addf %28, %31 : vector<16x1xf32>
      %33 = math.rsqrt %32 : vector<16x1xf32>
      %34 = vector.broadcast %33 : vector<16x1xf32> to vector<16x32xf32>
      %35 = arith.mulf %30, %34 : vector<16x32xf32>
      %c0_21 = arith.constant 0 : index
      %c0_22 = arith.constant 0 : index
      %36 = vector.load %arg6[%c0_21, %c0_22] : memref<1x32xf32, #tpu.memory_space<vmem>>, vector<1x32xf32>
      %37 = vector.broadcast %36 : vector<1x32xf32> to vector<16x32xf32>
      %38 = arith.mulf %35, %37 : vector<16x32xf32>
      %c0_23 = arith.constant 0 : index
      %c0_24 = arith.constant 0 : index
      %39 = vector.load %arg7[%c0_23, %c0_24] : memref<1x32xf32, #tpu.memory_space<vmem>>, vector<1x32xf32>
      %40 = vector.broadcast %39 : vector<1x32xf32> to vector<16x32xf32>
      %41 = arith.addf %38, %40 : vector<16x32xf32>
      %c0_25 = arith.constant 0 : index
      %c0_26 = arith.constant 0 : index
      %42 = vector.load %arg8[%c0_25, %c0_26] : memref<16x32xf32, #tpu.memory_space<vmem>>, vector<16x32xf32>
      tpu.vector_store %arg8[%c0_25, %c0_26], %41 {strides = array<i32>} : memref<16x32xf32, #tpu.memory_space<vmem>>, vector<16x32xf32>,
    } else {
    }
    return
  }
  func.func @transform_0(%arg0: i32, %arg1: i32) -> (i32, i32) {
    %c0_i32 = arith.constant 0 : i32
    return %arg0, %arg1 : i32, i32
  }
  func.func @transform_1(%arg0: i32, %arg1: i32) -> (i32, i32) {
    %c0_i32 = arith.constant 0 : i32
    %c0_i32_0 = arith.constant 0 : i32
    return %arg1, %c0_i32 : i32, i32
  }
  func.func @transform_2(%arg0: i32, %arg1: i32) -> (i32, i32) {
    %c0_i32 = arith.constant 0 : i32
    %c0_i32_0 = arith.constant 0 : i32
    %c0_i32_1 = arith.constant 0 : i32
    return %c0_i32, %c0_i32_0 : i32, i32
  }
  func.func @transform_3(%arg0: i32, %arg1: i32) -> (i32, i32) {
    %c0_i32 = arith.constant 0 : i32
    %c0_i32_0 = arith.constant 0 : i32
    return %arg0, %c0_i32 : i32, i32
  }
  func.func @transform_4(%arg0: i32, %arg1: i32) -> (i32, i32) {
    %c0_i32 = arith.constant 0 : i32
    %c0_i32_0 = arith.constant 0 : i32
    %c0_i32_1 = arith.constant 0 : i32
    return %c0_i32, %c0_i32_0 : i32, i32
  }
  func.func @transform_5(%arg0: i32, %arg1: i32) -> (i32, i32) {
    %c0_i32 = arith.constant 0 : i32
    %c0_i32_0 = arith.constant 0 : i32
    %c0_i32_1 = arith.constant 0 : i32
    return %c0_i32, %c0_i32_0 : i32, i32
  }
  func.func @transform_6(%arg0: i32, %arg1: i32) -> (i32, i32) {
    %c0_i32 = arith.constant 0 : i32
    %c0_i32_0 = arith.constant 0 : i32
    return %arg0, %c0_i32 : i32, i32
  }
}

module attributes {stable_mosaic.version = 11 : i64} {
  func.func @_matmul_kernel(%arg0: i32, %arg1: i32, %arg2: i32, %arg3: memref<16x32xf32, #tpu.memory_space<vmem>>, %arg4: memref<32x50xf32, #tpu.memory_space<vmem>>, %arg5: memref<1x50xf32, #tpu.memory_space<vmem>>, %arg6: memref<16x50xf32, #tpu.memory_space<vmem>>, %arg7: memref<16x50xf32, #tpu.memory_space<vmem>>) attributes {dimension_semantics = [#tpu.dimension_semantics<parallel>, #tpu.dimension_semantics<parallel>, #tpu.dimension_semantics<arbitrary>], iteration_bounds = array<i64: 1, 1, 1>, scalar_prefetch = 0 : i64, scratch_operands = 1 : i64, tpu.core_type = #tpu.core_type<tc>, window_params = [{transform_indices = @transform_0, window_bounds = array<i64: 16, 32>}, {transform_indices = @transform_1, window_bounds = array<i64: 32, 50>}, {transform_indices = @transform_2, window_bounds = array<i64: 1, 50>}, {transform_indices = @transform_3, window_bounds = array<i64: 16, 50>}]} {
    %c0_i32 = arith.constant 0 : i32
    %0 = arith.cmpi eq, %arg2, %c0_i32 : i32
    %1 = arith.extui %0 : i1 to i32
    %c0_i32_0 = arith.constant 0 : i32
    %2 = arith.cmpi ne, %1, %c0_i32_0 : i32
    scf.if %2 {
      %cst_10 = arith.constant 0.000000e+00 : f32
      %12 = vector.broadcast %cst_10 : f32 to vector<16x50xf32>
      %c0_11 = arith.constant 0 : index
      %c0_12 = arith.constant 0 : index
      %13 = vector.load %arg7[%c0_11, %c0_12] : memref<16x50xf32, #tpu.memory_space<vmem>>, vector<16x50xf32>
      tpu.vector_store %arg7[%c0_11, %c0_12], %12 {strides = array<i32>} : memref<16x50xf32, #tpu.memory_space<vmem>>, vector<16x50xf32>,
    } else {
    }
    %c0 = arith.constant 0 : index
    %c0_1 = arith.constant 0 : index
    %3 = vector.load %arg7[%c0, %c0_1] : memref<16x50xf32, #tpu.memory_space<vmem>>, vector<16x50xf32>
    %c0_2 = arith.constant 0 : index
    %c0_3 = arith.constant 0 : index
    %4 = vector.load %arg3[%c0_2, %c0_3] : memref<16x32xf32, #tpu.memory_space<vmem>>, vector<16x32xf32>
    %c0_4 = arith.constant 0 : index
    %c0_5 = arith.constant 0 : index
    %5 = vector.load %arg4[%c0_4, %c0_5] : memref<32x50xf32, #tpu.memory_space<vmem>>, vector<32x50xf32>
    %cst = arith.constant dense<0.000000e+00> : vector<16x50xf32>
    %6 = tpu.matmul %4, %5, %cst {dimension_numbers = #tpu.dot_dimension_numbers<[1], [0], [0], [1], [0, 0, 1, 1], [], []>} : vector<16x32xf32>, vector<32x50xf32>, vector<16x50xf32> -> vector<16x50xf32>
    %7 = arith.addf %3, %6 : vector<16x50xf32>
    %c0_6 = arith.constant 0 : index
    %c0_7 = arith.constant 0 : index
    %8 = vector.load %arg7[%c0_6, %c0_7] : memref<16x50xf32, #tpu.memory_space<vmem>>, vector<16x50xf32>
    tpu.vector_store %arg7[%c0_6, %c0_7], %7 {strides = array<i32>} : memref<16x50xf32, #tpu.memory_space<vmem>>, vector<16x50xf32>,
    %c0_i32_8 = arith.constant 0 : i32
    %9 = arith.cmpi eq, %arg2, %c0_i32_8 : i32
    %10 = arith.extui %9 : i1 to i32
    %c0_i32_9 = arith.constant 0 : i32
    %11 = arith.cmpi ne, %10, %c0_i32_9 : i32
    scf.if %11 {
      %c0_10 = arith.constant 0 : index
      %c0_11 = arith.constant 0 : index
      %12 = vector.load %arg7[%c0_10, %c0_11] : memref<16x50xf32, #tpu.memory_space<vmem>>, vector<16x50xf32>
      %c0_12 = arith.constant 0 : index
      %c0_13 = arith.constant 0 : index
      %13 = vector.load %arg5[%c0_12, %c0_13] : memref<1x50xf32, #tpu.memory_space<vmem>>, vector<1x50xf32>
      %14 = vector.broadcast %13 : vector<1x50xf32> to vector<16x50xf32>
      %15 = arith.addf %12, %14 : vector<16x50xf32>
      %c0_14 = arith.constant 0 : index
      %c0_15 = arith.constant 0 : index
      %16 = vector.load %arg6[%c0_14, %c0_15] : memref<16x50xf32, #tpu.memory_space<vmem>>, vector<16x50xf32>
      tpu.vector_store %arg6[%c0_14, %c0_15], %15 {strides = array<i32>} : memref<16x50xf32, #tpu.memory_space<vmem>>, vector<16x50xf32>,
    } else {
    }
    return
  }
  func.func @transform_0(%arg0: i32, %arg1: i32, %arg2: i32) -> (i32, i32) {
    %c0_i32 = arith.constant 0 : i32
    return %arg0, %arg2 : i32, i32
  }
  func.func @transform_1(%arg0: i32, %arg1: i32, %arg2: i32) -> (i32, i32) {
    %c0_i32 = arith.constant 0 : i32
    return %arg2, %arg1 : i32, i32
  }
  func.func @transform_2(%arg0: i32, %arg1: i32, %arg2: i32) -> (i32, i32) {
    %c0_i32 = arith.constant 0 : i32
    %c0_i32_0 = arith.constant 0 : i32
    return %c0_i32, %arg1 : i32, i32
  }
  func.func @transform_3(%arg0: i32, %arg1: i32, %arg2: i32) -> (i32, i32) {
    %c0_i32 = arith.constant 0 : i32
    return %arg0, %arg1 : i32, i32
  }
}

</mosaic_0001>

<bundles_post_ra>
// kernel: decoder_forward.17
= control target key start
LH: loop header
LB: loop body
LE: loop exit
PB: predicated region body
PF: predicated region fallthrough
CT: control target
= control target key end

     0   :  { %vm18_vm0 = vcmask 261120   ;;  %v164_v3 = vmov 0.0   ;;  %s220_s1 = inlined_call_operand.vmem [shape: f32[32,32], index: 1, kind: input, shape index: {}]   ;;  %s221_s0 = inlined_call_operand.vmem [shape: f32[16,32], index: 0, kind: input, shape index: {}]   ;;  %s222_s2 = inlined_call_operand.vmem [shape: f32[1,32], index: 2, kind: input, shape index: {}]   ;;  %s223_s3 = inlined_call_operand.vmem [shape: f32[16,32], index: 3, kind: output, shape index: {}]  }
   0x1   :  { %v25_v0 = vld [vmem:[%s220_s1] sm:$0xff]  ;;  %v26_v1 = vld [vmem:[%s220_s1 + $0x8] sm:$0xff]  ;;  %v27_v2 = vld [vmem:[%s220_s1 + $0x10] sm:$0xff]  ;;  %20 = vst.msk [vmem:[#allocation2 + $0x8] sm:$0xff] %vm18_vm0, %v164_v3 }
   0x2   :  { %19 = vst.msk [vmem:[#allocation2] sm:$0xff] %vm18_vm0, %v164_v3  ;;  %v155_v4 = vpack.c.bf16 %v26_v1, %v25_v0  ;;  %v28_v5 = vld [vmem:[%s220_s1 + $0x18] sm:$0xff]  ;;  %v23_v6 = vld [vmem:[%s221_s0] sm:$0xff]  ;;  %v24_v8 = vld [vmem:[%s221_s0 + $0x8] sm:$0xff] }
   0x3   :  { %v159_v7 = vpack.c.bf16 %v28_v5, %v27_v2  ;;  %152 = vmatprep.mubr.msk.f32.mxu0 %vm18_vm0, %v23_v6  ;;  %v137_v15 = vld [vmem:[%s222_s2] ss:$0 sm:$0xff] }
   0x4   :  { %156 = vmatprep.subr.bf16.mxu0 %v155_v4 }
   0x5   :  { %158 = vmatpush3.bf16.msra.mxu0 %v155_v4 }
   0x6   :  { %160 = vmatprep.subr.bf16.mxu0 %v159_v7 }
   0x8   :  { %v22_v9 = vld [vmem:[#allocation2 + $0x8] sm:$0xff] }
   0x9   :  { %162 = vmatpush3.bf16.msra.mxu0 %v159_v7  ;;  %v21_v10 = vld [vmem:[#allocation2] sm:$0xff] }
   0xc   :  { %153 = vmatmul.mubr.msk.f32.vlgmr.msra.gmra.mrb[0].mxu0 %vm18_vm0, %v24_v8 }
  0xdf   :  { %v154_v11 = vpop.f32.mrb[0].mxu0 }
  0xe0   :  { %v112_v12 = vadd.f32 %v154_v11, %v22_v9  ;;  %v102_v13 = vpop.f32.mrb[1].mxu0 }
  0xe1   :  { %v111_v14 = vadd.f32 %v102_v13, %v21_v10 }
  0xe2   :  { %114 = vst.msk [vmem:[#allocation2 + $0x8] sm:$0xff] %vm18_vm0, %v112_v12 }
  0xe3   :  { %113 = vst.msk [vmem:[#allocation2] sm:$0xff] %vm18_vm0, %v111_v14 }
  0xe9   :  { %v119_v16 = vld [vmem:[#allocation2 + $0x8] sm:$0xff] }
  0xea   :  { %v128_v17 = vadd.f32 %v137_v15, %v119_v16  ;;  %v118_v18 = vld [vmem:[#allocation2] sm:$0xff] }
  0xeb   :  { %v127_v19 = vadd.f32 %v137_v15, %v118_v18 }
  0xec   :  { %130 = vst.msk [vmem:[%s223_s3 + $0x8] sm:$0xff] %vm18_vm0, %v128_v17 }
  0xed   :  { %129 = vst.msk [vmem:[%s223_s3] sm:$0xff] %vm18_vm0, %v127_v19 }

// kernel: decoder_forward.18
= control target key start
LH: loop header
LB: loop body
LE: loop exit
PB: predicated region body
PF: predicated region fallthrough
CT: control target
= control target key end

     0   :  { %vm29_vm0 = vcmask 261120   ;;  %vm18_vm1 = vcmask 523264   ;;  %v165_v3 = vmov 0.0   ;;  %s221_s1 = inlined_call_operand.vmem [shape: f32[32,64], index: 1, kind: input, shape index: {}]   ;;  %s222_s0 = inlined_call_operand.vmem [shape: f32[16,32], index: 0, kind: input, shape index: {}]   ;;  %s223_s2 = inlined_call_operand.vmem [shape: f32[1,64], index: 2, kind: input, shape index: {}]   ;;  %s224_s3 = inlined_call_operand.vmem [shape: f32[16,64], index: 3, kind: output, shape index: {}]  }
   0x1   :  { %v25_v0 = vld [vmem:[%s221_s1] sm:$0xff]  ;;  %v26_v1 = vld [vmem:[%s221_s1 + $0x8] sm:$0xff]  ;;  %v27_v2 = vld [vmem:[%s221_s1 + $0x10] sm:$0xff]  ;;  %20 = vst.msk [vmem:[#allocation2 + $0x8] sm:$0xff] %vm18_vm1, %v165_v3 }
   0x2   :  { %19 = vst.msk [vmem:[#allocation2] sm:$0xff] %vm18_vm1, %v165_v3  ;;  %v156_v4 = vpack.c.bf16 %v26_v1, %v25_v0  ;;  %v28_v5 = vld [vmem:[%s221_s1 + $0x18] sm:$0xff]  ;;  %v23_v6 = vld [vmem:[%s222_s0] sm:$0xff]  ;;  %v24_v8 = vld [vmem:[%s222_s0 + $0x8] sm:$0xff] }
   0x3   :  { %v160_v7 = vpack.c.bf16 %v28_v5, %v27_v2  ;;  %153 = vmatprep.mubr.msk.f32.mxu0 %vm29_vm0, %v23_v6  ;;  %v138_v15 = vld [vmem:[%s223_s2] ss:$0 sm:$0xff] }
   0x4   :  { %157 = vmatprep.subr.bf16.mxu0 %v156_v4 }
   0x5   :  { %159 = vmatpush3.bf16.msra.mxu0 %v156_v4 }
   0x6   :  { %161 = vmatprep.subr.bf16.mxu0 %v160_v7 }
   0x8   :  { %v22_v9 = vld [vmem:[#allocation2 + $0x8] sm:$0xff] }
   0x9   :  { %163 = vmatpush3.bf16.msra.mxu0 %v160_v7  ;;  %v21_v10 = vld [vmem:[#allocation2] sm:$0xff] }
   0xc   :  { %154 = vmatmul.mubr.msk.f32.vlgmr.msra.gmra.mrb[0].mxu0 %vm29_vm0, %v24_v8 }
  0xdf   :  { %v155_v11 = vpop.f32.mrb[0].mxu0 }
  0xe0   :  { %v112_v12 = vadd.f32 %v155_v11, %v22_v9  ;;  %v102_v13 = vpop.f32.mrb[1].mxu0 }
  0xe1   :  { %v111_v14 = vadd.f32 %v102_v13, %v21_v10 }
  0xe2   :  { %115 = vst.msk [vmem:[#allocation2 + $0x8] sm:$0xff] %vm18_vm1, %v112_v12 }
  0xe3   :  { %114 = vst.msk [vmem:[#allocation2] sm:$0xff] %vm18_vm1, %v111_v14 }
  0xe9   :  { %v120_v16 = vld [vmem:[#allocation2 + $0x8] sm:$0xff] }
  0xea   :  { %v129_v17 = vadd.f32 %v138_v15, %v120_v16  ;;  %v119_v18 = vld [vmem:[#allocation2] sm:$0xff] }
  0xeb   :  { %v128_v19 = vadd.f32 %v138_v15, %v119_v18 }
  0xec   :  { %131 = vst.msk [vmem:[%s224_s3 + $0x8] sm:$0xff] %vm18_vm1, %v129_v17 }
  0xed   :  { %130 = vst.msk [vmem:[%s224_s3] sm:$0xff] %vm18_vm1, %v128_v19 }

// kernel: decoder_forward.15
= control target key start
LH: loop header
LB: loop body
LE: loop exit
PB: predicated region body
PF: predicated region fallthrough
CT: control target
= control target key end

     0   :  { %vm29_vm0 = vcmask 261120   ;;  %vm18_vm1 = vcmask 785408   ;;  %v165_v3 = vmov 0.0   ;;  %s221_s1 = inlined_call_operand.vmem [shape: f32[32,96], index: 1, kind: input, shape index: {}]   ;;  %s222_s0 = inlined_call_operand.vmem [shape: f32[16,32], index: 0, kind: input, shape index: {}]   ;;  %s223_s2 = inlined_call_operand.vmem [shape: f32[1,96], index: 2, kind: input, shape index: {}]   ;;  %s224_s3 = inlined_call_operand.vmem [shape: f32[16,96], index: 3, kind: output, shape index: {}]  }
   0x1   :  { %v25_v0 = vld [vmem:[%s221_s1] sm:$0xff]  ;;  %v26_v1 = vld [vmem:[%s221_s1 + $0x8] sm:$0xff]  ;;  %v27_v2 = vld [vmem:[%s221_s1 + $0x10] sm:$0xff]  ;;  %20 = vst.msk [vmem:[#allocation2 + $0x8] sm:$0xff] %vm18_vm1, %v165_v3 }
   0x2   :  { %19 = vst.msk [vmem:[#allocation2] sm:$0xff] %vm18_vm1, %v165_v3  ;;  %v156_v4 = vpack.c.bf16 %v26_v1, %v25_v0  ;;  %v28_v5 = vld [vmem:[%s221_s1 + $0x18] sm:$0xff]  ;;  %v23_v6 = vld [vmem:[%s222_s0] sm:$0xff]  ;;  %v24_v8 = vld [vmem:[%s222_s0 + $0x8] sm:$0xff] }
   0x3   :  { %v160_v7 = vpack.c.bf16 %v28_v5, %v27_v2  ;;  %153 = vmatprep.mubr.msk.f32.mxu0 %vm29_vm0, %v23_v6  ;;  %v138_v15 = vld [vmem:[%s223_s2] ss:$0 sm:$0xff] }
   0x4   :  { %157 = vmatprep.subr.bf16.mxu0 %v156_v4 }
   0x5   :  { %159 = vmatpush3.bf16.msra.mxu0 %v156_v4 }
   0x6   :  { %161 = vmatprep.subr.bf16.mxu0 %v160_v7 }
   0x8   :  { %v22_v9 = vld [vmem:[#allocation2 + $0x8] sm:$0xff] }
   0x9   :  { %163 = vmatpush3.bf16.msra.mxu0 %v160_v7  ;;  %v21_v10 = vld [vmem:[#allocation2] sm:$0xff] }
   0xc   :  { %154 = vmatmul.mubr.msk.f32.vlgmr.msra.gmra.mrb[0].mxu0 %vm29_vm0, %v24_v8 }
  0xdf   :  { %v155_v11 = vpop.f32.mrb[0].mxu0 }
  0xe0   :  { %v112_v12 = vadd.f32 %v155_v11, %v22_v9  ;;  %v102_v13 = vpop.f32.mrb[1].mxu0 }
  0xe1   :  { %v111_v14 = vadd.f32 %v102_v13, %v21_v10 }
  0xe2   :  { %115 = vst.msk [vmem:[#allocation2 + $0x8] sm:$0xff] %vm18_vm1, %v112_v12 }
  0xe3   :  { %114 = vst.msk [vmem:[#allocation2] sm:$0xff] %vm18_vm1, %v111_v14 }
  0xe9   :  { %v120_v16 = vld [vmem:[#allocation2 + $0x8] sm:$0xff] }
  0xea   :  { %v129_v17 = vadd.f32 %v138_v15, %v120_v16  ;;  %v119_v18 = vld [vmem:[#allocation2] sm:$0xff] }
  0xeb   :  { %v128_v19 = vadd.f32 %v138_v15, %v119_v18 }
  0xec   :  { %131 = vst.msk [vmem:[%s224_s3 + $0x8] sm:$0xff] %vm18_vm1, %v129_v17 }
  0xed   :  { %130 = vst.msk [vmem:[%s224_s3] sm:$0xff] %vm18_vm1, %v128_v19 }

// kernel: decoder_forward.16
= control target key start
LH: loop header
LB: loop body
LE: loop exit
PB: predicated region body
PF: predicated region fallthrough
CT: control target
= control target key end

     0   :  { %s1455_s27 = smov 0   ;;  %s1574_s0 = inlined_call_operand.vmem [shape: f32[2,8,32], index: 0, kind: input, shape index: {}]   ;;  %s1575_s1 = inlined_call_operand.vmem [shape: f32[2,8,64], index: 1, kind: input, shape index: {}]   ;;  %s1576_s2 = inlined_call_operand.vmem [shape: s32[2,1,8,8], index: 2, kind: input, shape index: {}]   ;;  %s1577_s3 = inlined_call_operand.vmem [shape: f32[2,8,32], index: 3, kind: input, shape index: {}]   ;;  %s1578_s4 = inlined_call_operand.vmem [shape: f32[32,32], index: 4, kind: input, shape index: {}]   ;;  %s1579_s5 = inlined_call_operand.vmem [shape: f32[1,32], index: 5, kind: input, shape index: {}]   ;;  %s1580_s6 = inlined_call_operand.vmem [shape: f32[1,32], index: 6, kind: input, shape index: {}]   ;;  %s1581_s7 = inlined_call_operand.vmem [shape: f32[1,32], index: 7, kind: input, shape index: {}]   ;;  %s1582_s8 = inlined_call_operand.vmem [shape: f32[2,8,32], index: 8, kind: output, shape index: {}]  }
   0x1 LB: > { %s1244_s28 = sadd.s32 4294967295, %s1395_s27   ;;  %p1248_p0 = scmp.ge.s32.totalorder %s1395_s27, 1  ;;  %s1395_s27 = sphi %s1455_s27, %s18_s27  }
   0x2   : > { %p288_p1 = scmp.lt.s32.totalorder %s1395_s27, 3 }
   0x4   : > { %p289_p2 = pnand %p1248_p0, %p288_p1 }
   0x5   : > { %p332_p3 = scmp.lt.s32.totalorder (!%p289_p2), %s1244_s28, 1  ;;  %v1397_v0 = vmov (!%p289_p2), 0.0   ;;  %vm1398_vm0 = vmmov (!%p289_p2), 0   ;;  %vm357_vm1 = vcmask (!%p289_p2), 64512   ;;  %s1399_s14 = smov (!%p289_p2), 120   ;;  %vm1033_vm3 = vcmask (!%p289_p2), 130048  }
   0x6   : > { %292 = sbr.rel (%p289_p2) target bundleno = 1529 (0x5f9), region = 52  ;;  %1293 = vmatprep.subr.mxu0 (!%p289_p2), %v1397_v0  ;;  %1295 = vmatprep.mubr.msk.f32.mxu0 (!%p289_p2), %vm1398_vm0, %v1397_v0  ;;  %s1400_s15 = smov (!%p289_p2), 112   ;;  %vm1035_vm4 = vcmask (!%p289_p2), 195584   ;;  %vm1048_vm5 = vcmask (!%p289_p2), 261120  }
   0x7   : > { %1303 = vmatprep.subr.mxu1 (!%p289_p2), %v1397_v0  ;;  %1305 = vmatprep.mubr.msk.f32.mxu1 (!%p289_p2), %vm1398_vm0, %v1397_v0  ;;  %s1401_s16 = smov (!%p289_p2), 104   ;;  %s1402_s20 = smov (!%p289_p2), 96  }
   0x8   : > { %s1403_s21 = smov (!%p289_p2), 80   ;;  %s1404_s22 = smov (!%p289_p2), 72  }
   0x9   : > { %s1405_s23 = smov (!%p289_p2), 88   ;;  %s1407_s12 = smov (!%p289_p2), 8  }
   0xd   : > { %s1584_s28 = smov (!%p332_p3, %s1244_s28), 1 }
   0xe   : > { %s1469_s29 = sshll.u32 %s1584_s28, 3 }
   0xf   : > { %s339_s10 = scalar_lea.vmem %s1575_s1, %s1469_s29  ;;  %s335_s13 = scalar_lea.vmem %s1574_s0, %s1469_s29 }
  0x10   : > { %v1479_v1 = vld [vmem:[%s339_s10] sm:$0xff]  ;;  %s343_s19 = scalar_lea.vmem %s1576_s2, %s1469_s29  ;;  %s347_s17 = scalar_lea.vmem %s1577_s3, %s1469_s29 }
  0x11   : > { %v354_v2 = vld [vmem:[%s335_s13] sm:$0xff]  ;;  %524 = vrot.lane.b32.xlu0 %v1479_v1, %s1399_s14  ;;  %1294 = vmatpush3.xpose.msk.msra.mxu0 %vm357_vm1, %v1479_v1  ;;  %s1408_s13 = smov 16   ;;  %s351_s26 = scalar_lea.vmem %s1582_s8, %s1469_s29 }
  0x12   : > { %v355_v3 = vmul.f32 0.35355338, %v354_v2  ;;  %690 = vrot.lane.b32.xlu1 %v1479_v1, %s1400_s15  ;;  %1298 = vmatprep.subr.mxu0 %v1397_v0  ;;  %v352_v10 = vld [vmem:[%s343_s19] sm:$0xff] }
  0x13   : > { %vm353_vm2 = vcmp.eq.s32.totalorder %v352_v10, 0  ;;  %v1037_v2 = vld [vmem:[%s1578_s4] sm:$0xff] }
  0x14   : > { %1296 = vmatmul.mubr.msk.f32.vlgmr.msra.gmra.mrb[0].mxu0 %vm357_vm1, %v355_v3 }
  0x15   : > { %522 = vrot.lane.b32.xlu0 %v355_v3, %s1399_s14  ;;  %1300 = vmatprep.mubr.msk.f32.mxu0 %vm1398_vm0, %v1397_v0  ;;  %s1409_s14 = smov 24  }
  0x16   : > { %688 = vrot.lane.b32.xlu1 %v355_v3, %s1400_s15 }
  0x19   : > { %856 = vrot.lane.b32.xlu0 %v1479_v1, %s1401_s16 }
  0x1a   : > { %854 = vrot.lane.b32.xlu1 %v355_v3, %s1401_s16  ;;  %v1038_v3 = vld [vmem:[%s1578_s4 + $0x8] sm:$0xff] }
  0x83   : > { %v525_v4 = vpop.permute.xlu0 %524 }
  0x84   : > { %1304 = vmatpush3.xpose.msk.msra.mxu1 %vm357_vm1, %v525_v4  ;;  %v691_v5 = vpop.permute.xlu1 %690  ;;  %v1406_v4 = vmov 0.0|0.0  }
  0x85   : > { %1313 = vmatprep.subr.mxu1 %v1397_v0 }
  0x87   : > { %v523_v6 = vpop.permute.xlu0 %522 }
  0x88   : > { %1306 = vmatmul.mubr.msk.f32.vlgmr.msra.gmra.mrb[0].mxu1 %vm357_vm1, %v523_v6  ;;  %v689_v7 = vpop.permute.xlu1 %688  ;;  %v1040_v6 = vld [vmem:[%s1578_s4 + $0x18] sm:$0xff] }
  0x89   : > { %1314 = vmatpush3.xpose.msk.msra.mxu1 %vm357_vm1, %v691_v5  ;;  %1315 = vmatprep.mubr.msk.f32.mxu1 %vm1398_vm0, %v1397_v0  ;;  %v1345_v5 = vpack.c.bf16 %v1038_v3, %v1037_v2 }
  0x8a   : > { %1323 = vmatprep.subr.mxu1 %v1397_v0 }
  0x8b   : > { %v857_v8 = vpop.permute.xlu0 %856 }
  0x8c   : > { %1316 = vmatmul.mubr.msk.f32.vlgmr.msra.gmra.mrb[2].mxu1 %vm357_vm1, %v689_v7  ;;  %v855_v9 = vpop.permute.xlu1 %854 }
  0x8d   : > { %1324 = vmatpush3.xpose.msk.msra.mxu1 %vm357_vm1, %v857_v8  ;;  %1325 = vmatprep.mubr.msk.f32.mxu1 %vm1398_vm0, %v1397_v0 }
  0x8e   : > { %1344 = vmatprep.subr.bf16.mxu1 %v1406_v4 }
  0x90   : > { %1326 = vmatmul.mubr.msk.f32.vlgmr.msra.gmra.mrb[4].mxu1 %vm357_vm1, %v855_v9 }
  0x91   : > { %1341 = vmatprep.mubr.msk.f32.mxu1 %vm1398_vm0, %v1397_v0  ;;  %1346 = vmatpush3.bf16.msra.mxu1 %v1345_v5 }
  0x92   : > { %1347 = vmatprep.subr.bf16.mxu1 %v1406_v4 }
  0xe7   : > { %v430_v11 = vpop.f32.mrb[0].mxu0 }
  0xe8   : > { %v434_v12 = vsel %vm353_vm2, -10000.0, %v430_v11  ;;  %v1297_v13 = vpop.f32.mrb[1].mxu0 }
  0xe9   : > { %v435_v14 = vsel %vm357_vm1, %v434_v12, -inf }
  0xea   : > { %436 = vmax.xlane.f32.xlu0 %v435_v14 }
 0x15b   : > { %v596_v15 = vpop.f32.mrb[0].mxu1 }
 0x15c   : > { %v600_v16 = vsel %vm353_vm2, -10000.0, %v596_v15  ;;  %v1307_v17 = vpop.f32.mrb[1].mxu1 }
 0x15d   : > { %v601_v18 = vsel %vm357_vm1, %v600_v16, -inf }
 0x15e   : > { %602 = vmax.xlane.f32.xlu1 %v601_v18 }
 0x15f   : > { %v762_v19 = vpop.f32.mrb[2].mxu1 }
 0x160   : > { %v766_v20 = vsel %vm353_vm2, -10000.0, %v762_v19  ;;  %v1317_v21 = vpop.f32.mrb[3].mxu1 }
 0x161   : > { %v767_v22 = vsel %vm357_vm1, %v766_v20, -inf }
 0x162   : > { %768 = vmax.xlane.f32.xlu0 %v767_v22  ;;  %v1122_v22 = vld [vmem:[%s347_s17] sm:$0xff] }
 0x163   : > { %v928_v23 = vpop.f32.mrb[4].mxu1 }
 0x164   : > { %v932_v24 = vsel %vm353_vm2, -10000.0, %v928_v23  ;;  %v1327_v25 = vpop.f32.mrb[5].mxu1 }
 0x165   : > { %v933_v26 = vsel %vm357_vm1, %v932_v24, -inf }
 0x166   : > { %934 = vmax.xlane.f32.xlu0 %v933_v26 }
 0x16f   : > { %446 = vrot.lane.b32.xlu1 %v1479_v1, %s1402_s20 }
 0x177   : > { %v437_v27 = vpop.xlane.xlu0 %436 }
 0x178   : > { %v438_v28 = vsub.f32 %v434_v12, %v437_v27 }
 0x17a   : > { %v439_v29 = vmul.f32 1.442695, %v438_v28 }
 0x17c   : > { %1371 = vpow2.f32 %v439_v29 }
 0x186   : > { %v1372_v30 = vpop.eup %1371 }
 0x187   : > { %v441_v31 = vsel %vm357_vm1, %v1372_v30, 0.0 }
 0x193   : > { %442 = vadd.xlane.f32.xlu1 %v441_v31 }
 0x1eb   : > { %v603_v32 = vpop.xlane.xlu1 %602 }
 0x1ec   : > { %v604_v33 = vsub.f32 %v600_v16, %v603_v32 }
 0x1ee   : > { %v605_v34 = vmul.f32 1.442695, %v604_v33 }
 0x1ef   : > { %v769_v35 = vpop.xlane.xlu0 %768  ;;  %v447_v36 = vpop.permute.xlu1 %446 }
 0x1f0   : > { %1373 = vpow2.f32 %v605_v34  ;;  %v770_v37 = vsub.f32 %v766_v20, %v769_v35  ;;  %1299 = vmatpush3.msra.mxu0 %v447_v36  ;;  %v1266_v20 = vld [vmem:[%s1579_s5] ss:$0 sm:$0xff] }
 0x1f1   : > { %1308 = vmatprep.subr.mxu0 %v1397_v0  ;;  %v1268_v36 = vld [vmem:[%s1580_s6] ss:$0 sm:$0xff] }
 0x1f2   : > { %v771_v38 = vmul.f32 1.442695, %v770_v37 }
 0x1f3   : > { %v935_v39 = vpop.xlane.xlu0 %934 }
 0x1f4   : > { %1375 = vpow2.f32 %v771_v38  ;;  %v936_v40 = vsub.f32 %v932_v24, %v935_v39  ;;  %v1269_v38 = vld [vmem:[%s1581_s7] ss:$0 sm:$0xff] }
 0x1f6   : > { %v937_v41 = vmul.f32 1.442695, %v936_v40 }
 0x1f8   : > { %1377 = vpow2.f32 %v937_v41 }
 0x1fa   : > { %v1374_v42 = vpop.eup %1373 }
 0x1fb   : > { %v607_v43 = vsel %vm357_vm1, %v1374_v42, 0.0 }
 0x1fc   : > { %608 = vadd.xlane.f32.xlu0 %v607_v43 }
 0x1fe   : > { %v1376_v44 = vpop.eup %1375 }
 0x1ff   : > { %v773_v45 = vsel %vm357_vm1, %v1376_v44, 0.0 }
 0x200   : > { %774 = vadd.xlane.f32.xlu1 %v773_v45 }
 0x202   : > { %v1378_v46 = vpop.eup %1377 }
 0x203   : > { %v939_v47 = vsel %vm357_vm1, %v1378_v46, 0.0 }
 0x204   : > { %940 = vadd.xlane.f32.xlu0 %v939_v47 }
 0x211   : > { %778 = vrot.lane.b32.xlu1 %v1479_v1, %s1403_s21 }
 0x215   : > { %944 = vrot.lane.b32.xlu1 %v1479_v1, %s1404_s22 }
 0x21a   : > { %612 = vrot.lane.b32.xlu0 %v1479_v1, %s1405_s23 }
 0x220   : > { %v443_v48 = vpop.xlane.xlu1 %442 }
 0x221   : > { %1379 = vrcp.f32 %v443_v48 }
 0x22b   : > { %v1380_v49 = vpop.eup %1379 }
 0x22c   : > { %v445_v50 = vmul.f32 %v1380_v49, %v1372_v30 }
 0x22e   : > { %1301 = vmatmul.mubr.msk.f32.vlgmr.msra.gmra.mrb[2].mxu0 %vm357_vm1, %v445_v50 }
 0x22f   : > { %1310 = vmatprep.mubr.msk.f32.mxu0 %vm1398_vm0, %v1397_v0 }
 0x289   : > { %v609_v51 = vpop.xlane.xlu0 %608 }
 0x28a   : > { %1381 = vrcp.f32 %v609_v51 }
 0x28d   : > { %v775_v52 = vpop.xlane.xlu1 %774 }
 0x28e   : > { %1383 = vrcp.f32 %v775_v52 }
 0x291   : > { %v941_v53 = vpop.xlane.xlu0 %940  ;;  %v779_v54 = vpop.permute.xlu1 %778 }
 0x292   : > { %1385 = vrcp.f32 %v941_v53 }
 0x294   : > { %v1382_v55 = vpop.eup %1381 }
 0x295   : > { %v611_v56 = vmul.f32 %v1382_v55, %v1374_v42  ;;  %v613_v57 = vpop.permute.xlu0 %612  ;;  %v945_v60 = vpop.permute.xlu1 %944 }
 0x296   : > { %1309 = vmatpush3.msra.mxu0 %v613_v57 }
 0x297   : > { %1311 = vmatmul.mubr.msk.f32.vlgmr.msra.gmra.mrb[4].mxu0 %vm357_vm1, %v611_v56  ;;  %1318 = vmatprep.subr.mxu0 %v1397_v0 }
 0x298   : > { %v1384_v58 = vpop.eup %1383  ;;  %1319 = vmatpush3.msra.mxu0 %v779_v54  ;;  %1320 = vmatprep.mubr.msk.f32.mxu0 %vm1398_vm0, %v1397_v0 }
 0x299   : > { %v777_v59 = vmul.f32 %v1384_v58, %v1376_v44  ;;  %1328 = vmatprep.subr.mxu0 %v1397_v0 }
 0x29b   : > { %1321 = vmatmul.mubr.msk.f32.vlgmr.msra.gmra.mrb[6].mxu0 %vm357_vm1, %v777_v59 }
 0x29c   : > { %v1386_v61 = vpop.eup %1385  ;;  %1329 = vmatpush3.msra.mxu0 %v945_v60  ;;  %1330 = vmatprep.mubr.msk.f32.mxu0 %vm1398_vm0, %v1397_v0  ;;  %v1039_v0 = vld [vmem:[%s1578_s4 + $0x10] sm:$0xff] }
 0x29d   : > { %v943_v62 = vmul.f32 %v1386_v61, %v1378_v46  ;;  %v1348_v7 = vpack.c.bf16 %v1040_v6, %v1039_v0 }
 0x29f   : > { %1331 = vmatmul.mubr.msk.f32.vlgmr.msra.gmra.mrb[8].mxu0 %vm357_vm1, %v943_v62  ;;  %1349 = vmatpush3.bf16.msra.mxu1 %v1348_v7 }
 0x301   : > { %v518_v63 = vpop.f32.mrb[2].mxu0 }
 0x302   : > { %v1302_v1 = vpop.f32.mrb[3].mxu0 }
 0x36a   : > { %v684_v8 = vpop.f32.mrb[4].mxu0 }
 0x36b   : > { %1021 = vrot.lane.b32.xlu0 %v684_v8, %s1407_s12  ;;  %v1312_v9 = vpop.f32.mrb[5].mxu0 }
 0x36e   : > { %v850_v10 = vpop.f32.mrb[6].mxu0 }
 0x36f   : > { %1025 = vrot.lane.b32.xlu1 %v850_v10, %s1408_s13  ;;  %v1322_v11 = vpop.f32.mrb[7].mxu0 }
 0x372   : > { %v1016_v12 = vpop.f32.mrb[8].mxu0 }
 0x373   : > { %1029 = vrot.lane.b32.xlu0 %v1016_v12, %s1409_s14  ;;  %v1332_v13 = vpop.f32.mrb[9].mxu0 }
 0x3dd   : > { %v1022_v14 = vpop.permute.xlu0 %1021 }
 0x3de   : > { %v1032_v16 = vsel %vm357_vm1, %v518_v63, %v1022_v14 }
 0x3e1   : > { %v1026_v15 = vpop.permute.xlu1 %1025 }
 0x3e2   : > { %v1034_v17 = vsel %vm1033_vm3, %v1032_v16, %v1026_v15 }
 0x3e5   : > { %v1030_v18 = vpop.permute.xlu0 %1029 }
 0x3e6   : > { %v1036_v19 = vsel %vm1035_vm4, %v1034_v17, %v1030_v18 }
 0x3e7   : > { %1342 = vmatmul.mubr.msk.f32.vlgmr.msra.gmra.mrb[6].mxu1 %vm1048_vm5, %v1036_v19 }
 0x4ba   : > { %v1118_v21 = vpop.f32.mrb[6].mxu1 }
 0x4bb   : > { %v1119_v23 = vadd.f32 %v1266_v20, %v1118_v21  ;;  %v1343_v24 = vpop.f32.mrb[7].mxu1 }
 0x4bd   : > { %v1123_v25 = vadd.f32 %v1122_v22, %v1119_v23 }
 0x4bf   : > { %v1124_v26 = vsel %vm1048_vm5, %v1123_v25, 0.0 }
 0x4c0   : > { %1125 = vadd.xlane.f32.xlu1 %v1124_v26 }
 0x54d   : > { %v1126_v27 = vpop.xlane.xlu1 %1125 }
 0x54e   : > { %v1128_v28 = vmul.f32 0.03125, %v1126_v27 }
 0x550   : > { %v1129_v29 = vsub.f32 %v1123_v25, %v1128_v28 }
 0x552   : > { %v1130_v30 = vmul.f32 %v1129_v29, %v1129_v29 }
 0x554   : > { %v1131_v31 = vsel %vm1048_vm5, %v1130_v30, 0.0 }
 0x555   : > { %1132 = vadd.xlane.f32.xlu0 %v1131_v31 }
 0x5e2   : > { %v1133_v32 = vpop.xlane.xlu0 %1132 }
 0x5e3   : > { %v1134_v33 = vmul.f32 0.03125, %v1133_v32 }
 0x5e5   : > { %v1135_v34 = vadd.f32 1e-12, %v1134_v33 }
 0x5e7   : > { %1387 = vrsqrt.f32 %v1135_v34 }
 0x5f1   : > { %v1388_v35 = vpop.eup %1387 }
 0x5f2   : > { %v1137_v37 = vmul.f32 %v1388_v35, %v1129_v29 }
 0x5f4   : > { %v1145_v39 = vmul.f32 %v1268_v36, %v1137_v37 }
 0x5f6   : > { %v1153_v40 = vadd.f32 %v1269_v38, %v1145_v39 }
 0x5f8   : > { %1154 = vst.msk [vmem:[%s351_s26] sm:$0xff] %vm1048_vm5, %v1153_v40 }
 0x5f9 PF: > { %s18_s27 = sadd.s32 1, %s1395_s27  }
 0x5fa   : > { %p15_p4 = scmp.ge.s32.totalorder %s18_s27, 4  }
 0x5fc   :  { %17 = sbr.rel (!%p15_p4) target bundleno = 1 (0x1), region = 91 }

// kernel: decoder_forward.20
= control target key start
LH: loop header
LB: loop body
LE: loop exit
PB: predicated region body
PF: predicated region fallthrough
CT: control target
= control target key end

     0   :  { %vm29_vm0 = vcmask 261120   ;;  %vm18_vm1 = vcmask 523264   ;;  %v167_v3 = vmov 0.0   ;;  %s223_s1 = inlined_call_operand.vmem [shape: f32[32,64], index: 1, kind: input, shape index: {}]   ;;  %s224_s0 = inlined_call_operand.vmem [shape: f32[16,32], index: 0, kind: input, shape index: {}]   ;;  %s225_s2 = inlined_call_operand.vmem [shape: f32[1,64], index: 2, kind: input, shape index: {}]   ;;  %s226_s3 = inlined_call_operand.vmem [shape: f32[16,64], index: 3, kind: output, shape index: {}]  }
   0x1   :  { %v25_v0 = vld [vmem:[%s223_s1] sm:$0xff]  ;;  %v26_v1 = vld [vmem:[%s223_s1 + $0x8] sm:$0xff]  ;;  %v27_v2 = vld [vmem:[%s223_s1 + $0x10] sm:$0xff]  ;;  %20 = vst.msk [vmem:[#allocation2 + $0x8] sm:$0xff] %vm18_vm1, %v167_v3 }
   0x2   :  { %19 = vst.msk [vmem:[#allocation2] sm:$0xff] %vm18_vm1, %v167_v3  ;;  %v158_v4 = vpack.c.bf16 %v26_v1, %v25_v0  ;;  %v28_v5 = vld [vmem:[%s223_s1 + $0x18] sm:$0xff]  ;;  %v23_v6 = vld [vmem:[%s224_s0] sm:$0xff]  ;;  %v24_v8 = vld [vmem:[%s224_s0 + $0x8] sm:$0xff] }
   0x3   :  { %v162_v7 = vpack.c.bf16 %v28_v5, %v27_v2  ;;  %155 = vmatprep.mubr.msk.f32.mxu0 %vm29_vm0, %v23_v6  ;;  %v140_v15 = vld [vmem:[%s225_s2] ss:$0 sm:$0xff] }
   0x4   :  { %159 = vmatprep.subr.bf16.mxu0 %v158_v4 }
   0x5   :  { %161 = vmatpush3.bf16.msra.mxu0 %v158_v4 }
   0x6   :  { %163 = vmatprep.subr.bf16.mxu0 %v162_v7 }
   0x8   :  { %v22_v9 = vld [vmem:[#allocation2 + $0x8] sm:$0xff] }
   0x9   :  { %165 = vmatpush3.bf16.msra.mxu0 %v162_v7  ;;  %v21_v10 = vld [vmem:[#allocation2] sm:$0xff] }
   0xc   :  { %156 = vmatmul.mubr.msk.f32.vlgmr.msra.gmra.mrb[0].mxu0 %vm29_vm0, %v24_v8 }
  0xdf   :  { %v157_v11 = vpop.f32.mrb[0].mxu0 }
  0xe0   :  { %v112_v12 = vadd.f32 %v157_v11, %v22_v9  ;;  %v102_v13 = vpop.f32.mrb[1].mxu0 }
  0xe1   :  { %v111_v14 = vadd.f32 %v102_v13, %v21_v10 }
  0xe2   :  { %115 = vst.msk [vmem:[#allocation2 + $0x8] sm:$0xff] %vm18_vm1, %v112_v12 }
  0xe3   :  { %114 = vst.msk [vmem:[#allocation2] sm:$0xff] %vm18_vm1, %v111_v14 }
  0xe9   :  { %v120_v16 = vld [vmem:[#allocation2 + $0x8] sm:$0xff] }
  0xea   :  { %v129_v17 = vadd.f32 %v140_v15, %v120_v16  ;;  %v119_v18 = vld [vmem:[#allocation2] sm:$0xff] }
  0xeb   :  { %v128_v19 = vadd.f32 %v140_v15, %v119_v18 }
  0xec   :  { %v131_v20 = vmax.f32 %v129_v17, 0.0 }
  0xed   :  { %v130_v21 = vmax.f32 %v128_v19, 0.0 }
  0xee   :  { %133 = vst.msk [vmem:[%s226_s3 + $0x8] sm:$0xff] %vm18_vm1, %v131_v20 }
  0xef   :  { %132 = vst.msk [vmem:[%s226_s3] sm:$0xff] %vm18_vm1, %v130_v21 }

// kernel: decoder_forward.21
= control target key start
LH: loop header
LB: loop body
LE: loop exit
PB: predicated region body
PF: predicated region fallthrough
CT: control target
= control target key end

     0   :  { %vm27_vm0 = vcmask 261120   ;;  %vm42_vm1 = vcmask 523264   ;;  %v253_v3 = vmov 0.0   ;;  %s352_s1 = inlined_call_operand.vmem [shape: f32[64,32], index: 1, kind: input, shape index: {}]   ;;  %s353_s0 = inlined_call_operand.vmem [shape: f32[16,64], index: 0, kind: input, shape index: {}]   ;;  %s354_s2 = inlined_call_operand.vmem [shape: f32[1,32], index: 2, kind: input, shape index: {}]   ;;  %s355_s3 = inlined_call_operand.vmem [shape: f32[16,32], index: 3, kind: input, shape index: {}]   ;;  %s356_s4 = inlined_call_operand.vmem [shape: f32[1,32], index: 4, kind: input, shape index: {}]   ;;  %s357_s5 = inlined_call_operand.vmem [shape: f32[1,32], index: 5, kind: input, shape index: {}]   ;;  %s358_s6 = inlined_call_operand.vmem [shape: f32[16,32], index: 6, kind: output, shape index: {}]  }
   0x1   :  { %v34_v0 = vld [vmem:[%s352_s1] sm:$0xff]  ;;  %v35_v1 = vld [vmem:[%s352_s1 + $0x8] sm:$0xff]  ;;  %v36_v2 = vld [vmem:[%s352_s1 + $0x10] sm:$0xff]  ;;  %29 = vst.msk [vmem:[#allocation2 + $0x8] sm:$0xff] %vm27_vm0, %v253_v3 }
   0x2   :  { %28 = vst.msk [vmem:[#allocation2] sm:$0xff] %vm27_vm0, %v253_v3  ;;  %v232_v4 = vpack.c.bf16 %v35_v1, %v34_v0  ;;  %v37_v5 = vld [vmem:[%s352_s1 + $0x18] sm:$0xff]  ;;  %v38_v7 = vld [vmem:[%s352_s1 + $0x20] sm:$0xff]  ;;  %v39_v8 = vld [vmem:[%s352_s1 + $0x28] sm:$0xff] }
   0x3   :  { %v236_v6 = vpack.c.bf16 %v37_v5, %v36_v2  ;;  %v32_v9 = vld [vmem:[%s353_s0] sm:$0xff]  ;;  %v240_v10 = vpack.c.bf16 %v39_v8, %v38_v7  ;;  %v40_v11 = vld [vmem:[%s352_s1 + $0x30] sm:$0xff]  ;;  %v41_v12 = vld [vmem:[%s352_s1 + $0x38] sm:$0xff] }
   0x4   :  { %233 = vmatprep.subr.bf16.mxu0 %v232_v4  ;;  %229 = vmatprep.mubr.msk.f32.mxu0 %vm42_vm1, %v32_v9  ;;  %v244_v13 = vpack.c.bf16 %v41_v12, %v40_v11  ;;  %v33_v14 = vld [vmem:[%s353_s0 + $0x8] sm:$0xff]  ;;  %v200_v21 = vld [vmem:[%s354_s2] ss:$0 sm:$0xff] }
   0x5   :  { %235 = vmatpush3.bf16.msra.mxu0 %v232_v4  ;;  %v143_v24 = vld [vmem:[%s355_s3] sm:$0xff]  ;;  %v144_v27 = vld [vmem:[%s355_s3 + $0x8] sm:$0xff] }
   0x6   :  { %237 = vmatprep.subr.bf16.mxu0 %v236_v6  ;;  %v201_v49 = vld [vmem:[%s356_s4] ss:$0 sm:$0xff] }
   0x7   :  { %v202_v51 = vld [vmem:[%s357_s5] ss:$0 sm:$0xff] }
   0x8   :  { %v31_v15 = vld [vmem:[#allocation2 + $0x8] sm:$0xff] }
   0x9   :  { %239 = vmatpush3.bf16.msra.mxu0 %v236_v6  ;;  %v30_v16 = vld [vmem:[#allocation2] sm:$0xff] }
   0xa   :  { %241 = vmatprep.subr.bf16.mxu0 %v240_v10 }
   0xd   :  { %243 = vmatpush3.bf16.msra.mxu0 %v240_v10 }
   0xe   :  { %245 = vmatprep.subr.bf16.mxu0 %v244_v13 }
  0x11   :  { %247 = vmatpush3.bf16.msra.mxu0 %v244_v13 }
  0x14   :  { %230 = vmatmul.mubr.msk.f32.vlgmr.msra.gmra.mrb[0].mxu0 %vm42_vm1, %v33_v14 }
  0xe7   :  { %v231_v17 = vpop.f32.mrb[0].mxu0 }
  0xe8   :  { %v125_v18 = vadd.f32 %v231_v17, %v31_v15  ;;  %v115_v19 = vpop.f32.mrb[1].mxu0 }
  0xe9   :  { %v124_v20 = vadd.f32 %v115_v19, %v30_v16 }
  0xea   :  { %128 = vst.msk [vmem:[#allocation2 + $0x8] sm:$0xff] %vm27_vm0, %v125_v18 }
  0xeb   :  { %127 = vst.msk [vmem:[#allocation2] sm:$0xff] %vm27_vm0, %v124_v20 }
  0xf1   :  { %v133_v22 = vld [vmem:[#allocation2 + $0x8] sm:$0xff] }
  0xf2   :  { %v132_v23 = vld [vmem:[#allocation2] sm:$0xff]  ;;  %v142_v26 = vadd.f32 %v200_v21, %v133_v22 }
  0xf3   :  { %v141_v25 = vadd.f32 %v200_v21, %v132_v23 }
  0xf4   :  { %v146_v30 = vadd.f32 %v144_v27, %v142_v26 }
  0xf5   :  { %v145_v28 = vadd.f32 %v143_v24, %v141_v25 }
  0xf6   :  { %v150_v31 = vsel %vm27_vm0, %v146_v30, 0.0 }
  0xf7   :  { %v147_v29 = vsel %vm27_vm0, %v145_v28, 0.0 }
  0xf8   :  { %148 = vadd.xlane.f32.xlu0 %v147_v29 }
  0xfc   :  { %151 = vadd.xlane.f32.xlu0 %v150_v31 }
 0x185   :  { %v149_v32 = vpop.xlane.xlu0 %148 }
 0x186   :  { %v154_v33 = vmul.f32 0.03125, %v149_v32 }
 0x188   :  { %v156_v34 = vsub.f32 %v145_v28, %v154_v33 }
 0x189   :  { %v152_v35 = vpop.xlane.xlu0 %151 }
 0x18a   :  { %v155_v36 = vmul.f32 0.03125, %v152_v35  ;;  %v158_v37 = vmul.f32 %v156_v34, %v156_v34 }
 0x18c   :  { %v157_v38 = vsub.f32 %v146_v30, %v155_v36  ;;  %v160_v39 = vsel %vm27_vm0, %v158_v37, 0.0 }
 0x18d   :  { %161 = vadd.xlane.f32.xlu1 %v160_v39 }
 0x18e   :  { %v159_v40 = vmul.f32 %v157_v38, %v157_v38 }
 0x190   :  { %v163_v41 = vsel %vm27_vm0, %v159_v40, 0.0 }
 0x191   :  { %164 = vadd.xlane.f32.xlu1 %v163_v41 }
 0x21a   :  { %v162_v42 = vpop.xlane.xlu1 %161 }
 0x21b   :  { %v166_v43 = vmul.f32 0.03125, %v162_v42 }
 0x21d   :  { %v168_v44 = vadd.f32 1e-12, %v166_v43 }
 0x21e   :  { %v165_v45 = vpop.xlane.xlu1 %164 }
 0x21f   :  { %249 = vrsqrt.f32 %v168_v44  ;;  %v167_v46 = vmul.f32 0.03125, %v165_v45 }
 0x221   :  { %v169_v47 = vadd.f32 1e-12, %v167_v46 }
 0x223   :  { %251 = vrsqrt.f32 %v169_v47 }
 0x229   :  { %v250_v48 = vpop.eup %249 }
 0x22a   :  { %v172_v50 = vmul.f32 %v250_v48, %v156_v34 }
 0x22c   :  { %v181_v52 = vmul.f32 %v201_v49, %v172_v50 }
 0x22d   :  { %v252_v53 = vpop.eup %251 }
 0x22e   :  { %v190_v54 = vadd.f32 %v202_v51, %v181_v52  ;;  %v173_v55 = vmul.f32 %v252_v53, %v157_v38 }
 0x230   :  { %192 = vst.msk [vmem:[%s358_s6] sm:$0xff] %vm27_vm0, %v190_v54  ;;  %v182_v56 = vmul.f32 %v201_v49, %v173_v55 }
 0x232   :  { %v191_v57 = vadd.f32 %v202_v51, %v182_v56 }
 0x234   :  { %193 = vst.msk [vmem:[%s358_s6 + $0x8] sm:$0xff] %vm27_vm0, %v191_v57 }

// kernel: decoder_forward.29
= control target key start
LH: loop header
LB: loop body
LE: loop exit
PB: predicated region body
PF: predicated region fallthrough
CT: control target
= control target key end

     0   :  { %vm30_vm0 = vcmask 261120   ;;  %vm19_vm1 = vcmask 408576   ;;  %v205_v6 = vmov 0.0   ;;  %s270_s0 = inlined_call_operand.vmem [shape: f32[16,32], index: 0, kind: input, shape index: {}]   ;;  %s271_s1 = inlined_call_operand.vmem [shape: f32[32,50], index: 1, kind: input, shape index: {}]   ;;  %s272_s2 = inlined_call_operand.vmem [shape: f32[1,50], index: 2, kind: input, shape index: {}]   ;;  %s273_s3 = inlined_call_operand.hbm [shape: f32[16,50], index: 3, kind: output, shape index: {}]  }
   0x1   :  { %v26_v0 = vld [vmem:[%s271_s1] sm:$0xff]  ;;  %v27_v1 = vld [vmem:[%s271_s1 + $0x8] sm:$0xff]  ;;  %v28_v2 = vld [vmem:[%s271_s1 + $0x10] sm:$0xff]  ;;  %21 = vst.msk [vmem:[#allocation2 + $0x8] sm:$0xff] %vm19_vm1, %v205_v6 }
   0x2   :  { %v169_v3 = vpack.c.bf16 %v27_v1, %v26_v0  ;;  %v29_v4 = vld [vmem:[%s271_s1 + $0x18] sm:$0xff]  ;;  %v24_v5 = vld [vmem:[%s270_s0] sm:$0xff]  ;;  %20 = vst.msk [vmem:[#allocation2] sm:$0xff] %vm19_vm1, %v205_v6 }
   0x3   :  { %v173_v7 = vpack.c.bf16 %v29_v4, %v28_v2  ;;  %166 = vmatprep.mubr.msk.f32.mxu0 %vm30_vm0, %v24_v5 }
   0x4   :  { %8 = vsyncpa [#allocation4], 0  ;;  %170 = vmatprep.subr.bf16.mxu0 %v169_v3  ;;  %v25_v8 = vld [vmem:[%s270_s0 + $0x8] sm:$0xff]  ;;  %v151_v15 = vld [vmem:[%s272_s2] ss:$0 sm:$0xff]  ;;  %s206_s25 = smov [#allocation3]  }
   0x5   :  { %172 = vmatpush3.bf16.msra.mxu0 %v169_v3  ;;  %s138_s26 = sshll.u32 %s206_s25, 4  ;;  %s139_s26 = int_to_ptr.vmem [resolvable:$true] %s138_s26 }
   0x6   :  { %174 = vmatprep.subr.bf16.mxu0 %v173_v7  ;;  %s181_s0 = scalar_lea.vmem %s139_s26, 256  ;;  %p186_p1 = scmp.lt.s32.totalorder %s139_s26, %s139_s26 }
   0x7   :  { %p182_p0 = scmp.ne.s32.totalorder %s139_s26, %s181_s0  ;;  %p187_p2 = scmp.lt.s32.totalorder %s181_s0, %s181_s0 }
   0x8   :  { %v23_v9 = vld [vmem:[#allocation2 + $0x8] sm:$0xff] }
   0x9   :  { %176 = vmatpush3.bf16.msra.mxu0 %v173_v7  ;;  %v22_v10 = vld [vmem:[#allocation2] sm:$0xff]  ;;  %p188_p3 = por %p187_p2, %p186_p1 }
   0xb   :  { %p189_p4 = pnand %p188_p3, %p182_p0 }
   0xc   :  { %167 = vmatmul.mubr.msk.f32.vlgmr.msra.gmra.mrb[0].mxu0 %vm30_vm0, %v25_v8 }
  0xdf   :  { %v168_v11 = vpop.f32.mrb[0].mxu0 }
  0xe0   :  { %v113_v12 = vadd.f32 %v168_v11, %v23_v9  ;;  %v103_v13 = vpop.f32.mrb[1].mxu0 }
  0xe1   :  { %v112_v14 = vadd.f32 %v103_v13, %v22_v10 }
  0xe2   :  { %116 = vst.msk [vmem:[#allocation2 + $0x8] sm:$0xff] %vm19_vm1, %v113_v12 }
  0xe3   :  { %115 = vst.msk [vmem:[#allocation2] sm:$0xff] %vm19_vm1, %v112_v14 }
  0xe9   :  { %v121_v16 = vld [vmem:[#allocation2 + $0x8] sm:$0xff] }
  0xea   :  { %v120_v17 = vld [vmem:[#allocation2] sm:$0xff]  ;;  %v130_v18 = vadd.f32 %v151_v15, %v121_v16 }
  0xeb   :  { %v129_v19 = vadd.f32 %v151_v15, %v120_v17 }
  0xec   :  { %132 = vst.msk [vmem:[#allocation3 + $0x8] sm:$0xff] %vm19_vm1, %v130_v18 }
  0xed   :  { %131 = vst.msk [vmem:[#allocation3] sm:$0xff] %vm19_vm1, %v129_v19 }
  0xee   :  { %192 = shalt.err (!%p189_p4)
}
  0xef   :  { %s193_s28 = scalar_lea.hbm %s273_s3, 256 }
  0xf0   :  { %p194_p5 = scmp.ne.s32.totalorder %s273_s3, %s193_s28  ;;  %p197_p6 = scmp.lt.u32.totalorder %s193_s28, %s273_s3 }
  0xf2   :  { %p199_p7 = pnand %p197_p6, %p194_p5 }
  0xf4   :  { %202 = shalt.err (!%p199_p7)
}
  0xf5   :  { %s207_s6 = smov 128   ;;  %s208_s7 = smov 8  }
  0xf6   :  { %144 = dma.vmem_to_hbm [thread:$0]  %s139_s26, 256, %s273_s3, [#allocation4], %s207_s6, %s207_s6, %s208_s7  }
  0xf7   :  { %203 = dma.done.wait [#allocation4], 256  }
  0xf8   :  { %204 = vsyncadd [#allocation4], 4294967040 }
  0xf9   :  { %148 = vsyncpa [#allocation4], 1 }

</bundles_post_ra>
